<compile_context>
chip_gen: v6e
topology: v6e:2x2x1
jax: 0.10.0
libtpu: 0.0.40
codegen_flags: <defaults>
</compile_context>

<pallas_src>
import functools

import jax
import jax.numpy as jnp
from jax import lax
from jax.experimental import pallas as pl
from jax.experimental.pallas import tpu as pltpu

EPS = 1e-5
NEG_INF = -1e30
VMEM_LIMIT = 64 * 1024 * 1024

# dot_general dimension numbers for 2-D matmuls (no batch dims).
NT = (((1,), (1,)), ((), ()))   # A (m,k) . B^T, B is (n,k) -> (m, n)


def _layernorm(x, w, b):
    mu = jnp.mean(x, axis=-1, keepdims=True)
    var = jnp.mean((x - mu) ** 2, axis=-1, keepdims=True)
    return (x - mu) * lax.rsqrt(var + EPS) * w + b


def _bf16(x):
    return x.astype(jnp.bfloat16)


# ----------------------------------------------------------------------------
# Fused decoder stack kernel: grid = (batch_tiles, layer)
#   - residual stream resident in y_ref (bf16) across the layer axis
#   - final LayerNorm fused into the last-layer store
# ----------------------------------------------------------------------------
def decoder_stack_kernel(n_heads, head_size, ffn_chunk,
                         x_ref,
                         ln1w_ref, ln1b_ref, wqkv_ref, wo_ref, bo_ref,
                         ln2w_ref, ln2b_ref, w1_ref, b1_ref, w2_ref, b2_ref,
                         lnfw_ref, lnfb_ref,
                         y_ref,
                         mask_ref):
    layer = pl.program_id(1)
    n_layers = pl.num_programs(1)
    Bt, T, C = x_ref.shape
    R = Bt * T
    hs = head_size

    @pl.when(layer == 0)
    def _init():
        y_ref[...] = x_ref[...]                       # load residual stream
        row = lax.broadcasted_iota(jnp.int32, (T, T), 0)   # query index
        col = lax.broadcasted_iota(jnp.int32, (T, T), 1)   # key index
        mask_ref[...] = jnp.where(col <= row, 0.0, NEG_INF)

    x = y_ref[...].astype(jnp.float32).reshape(R, C)  # (R, C) f32 residuals

    # ---- multi-head causal self-attention on LN1(x) ----
    h1 = _layernorm(x, ln1w_ref[0], ln1b_ref[0])
    # Fused QKV projection: (R, C) . (3C, C)^T -> (R, 3C)
    qkv = _bf16(lax.dot_general(_bf16(h1), wqkv_ref[0], NT,
                                preferred_element_type=jnp.float32))
    qkv = qkv.reshape(Bt, T, 3 * C)                   # leading-dim split only
    mask = mask_ref[...]
    scale = hs ** -0.5

    sa = jnp.zeros((R, C), jnp.float32)
    # TODO(synk): at production T / head counts, put heads on a grid axis and
    # stream KV flash-style (online softmax) instead of this static head loop
    # over full (T, T) score blocks.
    for h in range(n_heads):
        q = qkv[:, :, h * hs:(h + 1) * hs]                       # (Bt, T, hs)
        k = qkv[:, :, C + h * hs:C + (h + 1) * hs]
        v = qkv[:, :, 2 * C + h * hs:2 * C + (h + 1) * hs]
        s = jnp.einsum('bqd,bkd->bqk', q, k,
                       preferred_element_type=jnp.float32)       # (Bt, T, T)
        s = s * scale + mask[None, :, :]
        s = s - jnp.max(s, axis=-1, keepdims=True)
        p = jnp.exp(s)
        p = p * pl.reciprocal(jnp.sum(p, axis=-1, keepdims=True), approx=True)
        o = jnp.einsum('bqk,bkd->bqd', _bf16(p), v,
                       preferred_element_type=jnp.float32)       # (Bt, T, hs)
        # Fold head output straight into the output projection (no concat).
        sa = sa + jnp.dot(_bf16(o.reshape(R, hs)),
                          wo_ref[0, h * hs:(h + 1) * hs, :],
                          preferred_element_type=jnp.float32)
    x = x + sa + bo_ref[0]                            # residual 1

    # ---- feed-forward on LN2(x), hidden dim chunked (no (R,4C) temp) ----
    h2 = _bf16(_layernorm(x, ln2w_ref[0], ln2b_ref[0]))
    H = w1_ref.shape[2]
    f = jnp.zeros((R, C), jnp.float32)
    for c0 in range(0, H, ffn_chunk):
        g = jnp.dot(h2, w1_ref[0, :, c0:c0 + ffn_chunk],
                    preferred_element_type=jnp.float32)
        g = jnp.maximum(g + b1_ref[0, :, c0:c0 + ffn_chunk], 0.0)
        f = f + jnp.dot(_bf16(g), w2_ref[0, c0:c0 + ffn_chunk, :],
                        preferred_element_type=jnp.float32)
    x = x + f + b2_ref[0]                             # residual 2

    @pl.when(layer < n_layers - 1)
    def _store_mid():
        y_ref[...] = _bf16(x).reshape(Bt, T, C)

    @pl.when(layer == n_layers - 1)
    def _store_last():
        # fuse the final LayerNorm so the LM head is a pure matmul+bias
        xn = _layernorm(x, lnfw_ref[...], lnfb_ref[...])
        y_ref[...] = _bf16(xn).reshape(Bt, T, C)


_STACK_KEYS = ("ln1_w", "ln1_b", "w_qkv", "w_o", "b_o",
               "ln2_w", "ln2_b", "w1", "b1", "w2", "b2")


def run_decoder_stack(x, stack_params, lnf_w, lnf_b, n_heads, head_size,
                      batch_tile=None, ffn_chunk=2048):
    B, T, C = x.shape
    L = stack_params["w_qkv"].shape[0]
    Bt = B if batch_tile is None else min(batch_tile, B)
    assert B % Bt == 0
    H = stack_params["w1"].shape[2]
    chunk = H if (H <= ffn_chunk or H % ffn_chunk != 0) else ffn_chunk

    weights = [stack_params[k] for k in _STACK_KEYS]
    layer_spec = lambda arr: pl.BlockSpec((1,) + arr.shape[1:],
                                          lambda bt, l: (l, 0, 0))
    kernel = functools.partial(decoder_stack_kernel, n_heads, head_size, chunk)
    return pl.pallas_call(
        kernel,
        out_shape=jax.ShapeDtypeStruct((B, T, C), jnp.bfloat16),
        grid=(B // Bt, L),                 # batch tiles parallel, layers serial
        in_specs=[pl.BlockSpec((Bt, T, C), lambda bt, l: (bt, 0, 0))]
                 + [layer_spec(w) for w in weights]
                 + [pl.BlockSpec((1, C), lambda bt, l: (0, 0)),
                    pl.BlockSpec((1, C), lambda bt, l: (0, 0))],
        out_specs=pl.BlockSpec((Bt, T, C), lambda bt, l: (bt, 0, 0)),
        scratch_shapes=[pltpu.VMEM((T, T), jnp.float32)],   # causal mask bias
        compiler_params=pltpu.CompilerParams(
            dimension_semantics=("parallel", "arbitrary"),
            vmem_limit_bytes=VMEM_LIMIT),
    )(x, *weights, lnf_w, lnf_b)


# ----------------------------------------------------------------------------
# LM head: pure matmul + bias (LN already fused into the decoder stack).
# Vocab axis is the OUTER grid axis so the big weight is streamed ~once.
# ----------------------------------------------------------------------------
def lm_head_kernel(x_ref, w_ref, b_ref, o_ref):
    o_ref[...] = (jnp.dot(x_ref[...], w_ref[...],
                          preferred_element_type=jnp.float32) + b_ref[...])


def run_lm_head(x, params, row_tile=512, vocab_tile=1024):
    # TODO(synk): on v5e/v6e (128 MiB VMEM) vocab_tile=2048 is better; 1024
    # keeps the double-buffered weight block inside v7x's 64 MiB.
    B, T, C = x.shape
    V = params["w_out"].shape[1]
    R = B * T
    x2 = x.reshape(R, C)                  # bf16, fold batch into the row axis
    tr = R if R <= row_tile else row_tile
    tv = V if V <= vocab_tile else vocab_tile
    # TODO(synk): ragged R/V would need pl.cdiv grids + masked stores.
    assert R % tr == 0 and V % tv == 0
    out = pl.pallas_call(
        lm_head_kernel,
        out_shape=jax.ShapeDtypeStruct((R, V), jnp.float32),
        grid=(V // tv, R // tr),          # vocab OUTER -> W block resident
        in_specs=[pl.BlockSpec((tr, C), lambda j, i: (i, 0)),
                  pl.BlockSpec((C, tv), lambda j, i: (0, j)),
                  pl.BlockSpec((1, tv), lambda j, i: (0, j))],
        out_specs=pl.BlockSpec((tr, tv), lambda j, i: (i, j)),
        compiler_params=pltpu.CompilerParams(
            dimension_semantics=("parallel", "parallel"),
            vmem_limit_bytes=VMEM_LIMIT),
    )(x2, params["w_out"], params["b_out"])
    return out.reshape(B, T, V)


# ----------------------------------------------------------------------------
# Parameters + forward
# ----------------------------------------------------------------------------
def init_params(key, vocab_size, dim, block_size, nb_blocks):
    C = dim

    def nrm(k, shape, dtype=jnp.float32, scale=0.02):
        return (scale * jax.random.normal(k, shape, jnp.float32)).astype(dtype)

    k_tok, k_pos, k_out, k_blk = jax.random.split(key, 4)
    bkeys = jax.random.split(k_blk, 4 * nb_blocks)

    def stacked(idx, shape, dtype):
        return jnp.stack([nrm(bkeys[4 * i + idx], shape, dtype)
                          for i in range(nb_blocks)], axis=0)

    return {
        "tok_emb": nrm(k_tok, (vocab_size, C)),
        "pos_emb": nrm(k_pos, (block_size, C)),
        "lnf_w": jnp.ones((1, C), jnp.float32),
        "lnf_b": jnp.zeros((1, C), jnp.float32),
        # TODO(synk): on v7x these MXU weights could be stored in fp8.
        "w_out": nrm(k_out, (C, vocab_size), jnp.bfloat16),
        "b_out": jnp.zeros((1, vocab_size), jnp.float32),
        "stack": {
            "ln1_w": jnp.ones((nb_blocks, 1, C), jnp.float32),
            "ln1_b": jnp.zeros((nb_blocks, 1, C), jnp.float32),
            # fused QKV, rows = [q | k | v] output channels
            "w_qkv": stacked(0, (3 * C, C), jnp.bfloat16),
            "w_o": stacked(1, (C, C), jnp.bfloat16),
            "b_o": jnp.zeros((nb_blocks, 1, C), jnp.float32),
            "ln2_w": jnp.ones((nb_blocks, 1, C), jnp.float32),
            "ln2_b": jnp.zeros((nb_blocks, 1, C), jnp.float32),
            "w1": stacked(2, (C, 4 * C), jnp.bfloat16),
            "b1": jnp.zeros((nb_blocks, 1, 4 * C), jnp.float32),
            "w2": stacked(3, (4 * C, C), jnp.bfloat16),
            "b2": jnp.zeros((nb_blocks, 1, C), jnp.float32),
        },
    }


def language_model_forward(params, token_idx, n_heads, head_size, block_size):
    # Embedding lookups are gathers -> left to XLA; the dense/attention hot
    # path runs inside the Pallas kernels.
    B, T = token_idx.shape
    assert T == block_size
    tok = jnp.take(params["tok_emb"], token_idx, axis=0)          # (B, T, C)
    pos = params["pos_emb"][:T]                                   # (T, C)
    x = _bf16(tok + pos[None, :, :])          # bf16 input: half the stack DMA
    y = run_decoder_stack(x, params["stack"], params["lnf_w"], params["lnf_b"],
                          n_heads, head_size)                     # bf16, LN'd
    return run_lm_head(y, params)                                 # (B, T, V)


if __name__ == "__main__":
    vocab_size = 64
    dim_token_embedding = 32
    block_size = 8
    nb_decoder_blocks = 2
    nb_heads_per_block = 4
    head_size = dim_token_embedding // nb_heads_per_block
    batch = 2

    key = jax.random.PRNGKey(0)
    pkey, dkey = jax.random.split(key)
    params = init_params(pkey, vocab_size, dim_token_embedding,
                         block_size, nb_decoder_blocks)
    token_idx = jax.random.randint(dkey, (batch, block_size), 0, vocab_size,
                                   dtype=jnp.int32)

    fwd = jax.jit(functools.partial(language_model_forward,
                                    n_heads=nb_heads_per_block,
                                    head_size=head_size,
                                    block_size=block_size))
    logits = fwd(params, token_idx)
    jax.block_until_ready(logits)
    assert logits.shape == (batch, block_size, vocab_size)
    assert logits.dtype == jnp.float32
    print("KERNEL_OK")
</pallas_src>

<mosaic_0001>
module attributes {stable_mosaic.version = 11 : i64} {
  func.func @lm_head_kernel(%arg0: i32, %arg1: i32, %arg2: memref<16x32xbf16, #tpu.memory_space<vmem>>, %arg3: memref<32x64xbf16, #tpu.memory_space<vmem>>, %arg4: memref<1x64xf32, #tpu.memory_space<vmem>>, %arg5: memref<16x64xf32, #tpu.memory_space<vmem>>) attributes {dimension_semantics = [#tpu.dimension_semantics<parallel>, #tpu.dimension_semantics<parallel>], iteration_bounds = array<i64: 1, 1>, scalar_prefetch = 0 : i64, scratch_operands = 0 : i64, tpu.core_type = #tpu.core_type<tc>, window_params = [{transform_indices = @transform_0, window_bounds = array<i64: 16, 32>}, {transform_indices = @transform_1, window_bounds = array<i64: 32, 64>}, {transform_indices = @transform_2, window_bounds = array<i64: 1, 64>}, {transform_indices = @transform_3, window_bounds = array<i64: 16, 64>}]} {
    %c0 = arith.constant 0 : index
    %c0_0 = arith.constant 0 : index
    %0 = vector.load %arg2[%c0, %c0_0] : memref<16x32xbf16, #tpu.memory_space<vmem>>, vector<16x32xbf16>
    %c0_1 = arith.constant 0 : index
    %c0_2 = arith.constant 0 : index
    %1 = vector.load %arg3[%c0_1, %c0_2] : memref<32x64xbf16, #tpu.memory_space<vmem>>, vector<32x64xbf16>
    %cst = arith.constant dense<0.000000e+00> : vector<16x64xf32>
    %2 = tpu.matmul %0, %1, %cst {dimension_numbers = #tpu.dot_dimension_numbers<[1], [0], [0], [1], [0, 0, 1, 1], [], []>} : vector<16x32xbf16>, vector<32x64xbf16>, vector<16x64xf32> -> vector<16x64xf32>
    %c0_3 = arith.constant 0 : index
    %c0_4 = arith.constant 0 : index
    %3 = vector.load %arg4[%c0_3, %c0_4] : memref<1x64xf32, #tpu.memory_space<vmem>>, vector<1x64xf32>
    %4 = vector.broadcast %3 : vector<1x64xf32> to vector<16x64xf32>
    %5 = arith.addf %2, %4 : vector<16x64xf32>
    %c0_5 = arith.constant 0 : index
    %c0_6 = arith.constant 0 : index
    %6 = vector.load %arg5[%c0_5, %c0_6] : memref<16x64xf32, #tpu.memory_space<vmem>>, vector<16x64xf32>
    tpu.vector_store %arg5[%c0_5, %c0_6], %5 {strides = array<i32>} : memref<16x64xf32, #tpu.memory_space<vmem>>, vector<16x64xf32>,
    return
  }
  func.func @transform_0(%arg0: i32, %arg1: i32) -> (i32, i32) {
    %c0_i32 = arith.constant 0 : i32
    %c0_i32_0 = arith.constant 0 : i32
    return %arg1, %c0_i32 : i32, i32
  }
  func.func @transform_1(%arg0: i32, %arg1: i32) -> (i32, i32) {
    %c0_i32 = arith.constant 0 : i32
    %c0_i32_0 = arith.constant 0 : i32
    return %c0_i32, %arg0 : i32, i32
  }
  func.func @transform_2(%arg0: i32, %arg1: i32) -> (i32, i32) {
    %c0_i32 = arith.constant 0 : i32
    %c0_i32_0 = arith.constant 0 : i32
    return %c0_i32, %arg0 : i32, i32
  }
  func.func @transform_3(%arg0: i32, %arg1: i32) -> (i32, i32) {
    %c0_i32 = arith.constant 0 : i32
    return %arg1, %arg0 : i32, i32
  }
}

module attributes {stable_mosaic.version = 11 : i64} {
  func.func @decoder_stack_kernel(%arg0: i32, %arg1: i32, %arg2: memref<2x8x32xbf16, #tpu.memory_space<vmem>>, %arg3: memref<1x1x32xf32, #tpu.memory_space<vmem>>, %arg4: memref<1x1x32xf32, #tpu.memory_space<vmem>>, %arg5: memref<1x96x32xbf16, #tpu.memory_space<vmem>>, %arg6: memref<1x32x32xbf16, #tpu.memory_space<vmem>>, %arg7: memref<1x1x32xf32, #tpu.memory_space<vmem>>, %arg8: memref<1x1x32xf32, #tpu.memory_space<vmem>>, %arg9: memref<1x1x32xf32, #tpu.memory_space<vmem>>, %arg10: memref<1x32x128xbf16, #tpu.memory_space<vmem>>, %arg11: memref<1x1x128xf32, #tpu.memory_space<vmem>>, %arg12: memref<1x128x32xbf16, #tpu.memory_space<vmem>>, %arg13: memref<1x1x32xf32, #tpu.memory_space<vmem>>, %arg14: memref<1x32xf32, #tpu.memory_space<vmem>>, %arg15: memref<1x32xf32, #tpu.memory_space<vmem>>, %arg16: memref<2x8x32xbf16, #tpu.memory_space<vmem>>, %arg17: memref<8x8xf32, #tpu.memory_space<vmem>>) attributes {dimension_semantics = [#tpu.dimension_semantics<parallel>, #tpu.dimension_semantics<arbitrary>], iteration_bounds = array<i64: 1, 2>, scalar_prefetch = 0 : i64, scratch_operands = 1 : i64, tpu.core_type = #tpu.core_type<tc>, window_params = [{transform_indices = @transform_0, window_bounds = array<i64: 2, 8, 32>}, {transform_indices = @transform_1, window_bounds = array<i64: 1, 1, 32>}, {transform_indices = @transform_2, window_bounds = array<i64: 1, 1, 32>}, {transform_indices = @transform_3, window_bounds = array<i64: 1, 96, 32>}, {transform_indices = @transform_4, window_bounds = array<i64: 1, 32, 32>}, {transform_indices = @transform_5, window_bounds = array<i64: 1, 1, 32>}, {transform_indices = @transform_6, window_bounds = array<i64: 1, 1, 32>}, {transform_indices = @transform_7, window_bounds = array<i64: 1, 1, 32>}, {transform_indices = @transform_8, window_bounds = array<i64: 1, 32, 128>}, {transform_indices = @transform_9, window_bounds = array<i64: 1, 1, 128>}, {transform_indices = @transform_10, window_bounds = array<i64: 1, 128, 32>}, {transform_indices = @transform_11, window_bounds = array<i64: 1, 1, 32>}, {pipeline_mode = #tpu.pipeline_mode<synchronous>, transform_indices = @transform_12, window_bounds = array<i64: 1, 32>}, {pipeline_mode = #tpu.pipeline_mode<synchronous>, transform_indices = @transform_13, window_bounds = array<i64: 1, 32>}, {transform_indices = @transform_14, window_bounds = array<i64: 2, 8, 32>}]} {
    %c0_i32 = arith.constant 0 : i32
    %0 = arith.cmpi eq, %arg1, %c0_i32 : i32
    %1 = arith.extui %0 : i1 to i32
    %c0_i32_0 = arith.constant 0 : i32
    %2 = arith.cmpi ne, %1, %c0_i32_0 : i32
    scf.if %2 {
      %c0_86 = arith.constant 0 : index
      %c0_87 = arith.constant 0 : index
      %c0_88 = arith.constant 0 : index
      %206 = vector.load %arg2[%c0_86, %c0_87, %c0_88] : memref<2x8x32xbf16, #tpu.memory_space<vmem>>, vector<2x8x32xbf16>
      %c0_89 = arith.constant 0 : index
      %c0_90 = arith.constant 0 : index
      %c0_91 = arith.constant 0 : index
      %207 = vector.load %arg16[%c0_89, %c0_90, %c0_91] : memref<2x8x32xbf16, #tpu.memory_space<vmem>>, vector<2x8x32xbf16>
      tpu.vector_store %arg16[%c0_89, %c0_90, %c0_91], %206 {strides = array<i32>} : memref<2x8x32xbf16, #tpu.memory_space<vmem>>, vector<2x8x32xbf16>,
      %208 = tpu.iota {dimensions = array<i32: 0>} : vector<8x8xi32>
      %209 = tpu.iota {dimensions = array<i32: 1>} : vector<8x8xi32>
      %210 = arith.cmpi sle, %209, %208 : vector<8x8xi32>
      %cst_92 = arith.constant 0.000000e+00 : f32
      %cst_93 = arith.constant -1.000000e+30 : f32
      %211 = vector.broadcast %cst_92 : f32 to vector<8x8xf32>
      %212 = vector.broadcast %cst_93 : f32 to vector<8x8xf32>
      %213 = arith.select %210, %211, %212 : vector<8x8xi1>, vector<8x8xf32>
      %c0_94 = arith.constant 0 : index
      %c0_95 = arith.constant 0 : index
      %214 = vector.load %arg17[%c0_94, %c0_95] : memref<8x8xf32, #tpu.memory_space<vmem>>, vector<8x8xf32>
      tpu.vector_store %arg17[%c0_94, %c0_95], %213 {strides = array<i32>} : memref<8x8xf32, #tpu.memory_space<vmem>>, vector<8x8xf32>,
    } else {
    }
    %c0 = arith.constant 0 : index
    %c0_1 = arith.constant 0 : index
    %c0_2 = arith.constant 0 : index
    %3 = vector.load %arg16[%c0, %c0_1, %c0_2] : memref<2x8x32xbf16, #tpu.memory_space<vmem>>, vector<2x8x32xbf16>
    %4 = arith.extf %3 : vector<2x8x32xbf16> to vector<2x8x32xf32>
    %5 = vector.shape_cast %4 : vector<2x8x32xf32> to vector<16x32xf32>
    %c0_3 = arith.constant 0 : index
    %c0_4 = arith.constant 0 : index
    %c0_5 = arith.constant 0 : index
    %6 = vector.load %arg3[%c0_3, %c0_4, %c0_5] : memref<1x1x32xf32, #tpu.memory_space<vmem>>, vector<1x1x32xf32>
    %7 = vector.shape_cast %6 : vector<1x1x32xf32> to vector<1x32xf32>
    %c0_6 = arith.constant 0 : index
    %c0_7 = arith.constant 0 : index
    %c0_8 = arith.constant 0 : index
    %8 = vector.load %arg4[%c0_6, %c0_7, %c0_8] : memref<1x1x32xf32, #tpu.memory_space<vmem>>, vector<1x1x32xf32>
    %9 = vector.shape_cast %8 : vector<1x1x32xf32> to vector<1x32xf32>
    %cst = arith.constant dense<0.000000e+00> : vector<16xf32>
    %10 = vector.multi_reduction <add>, %5, %cst [1] : vector<16x32xf32> to vector<16xf32>
    %11 = vector.shape_cast %10 : vector<16xf32> to vector<16x1xf32>
    %cst_9 = arith.constant 3.200000e+01 : f32
    %12 = vector.broadcast %cst_9 : f32 to vector<16x1xf32>
    %13 = arith.divf %11, %12 : vector<16x1xf32>
    %14 = vector.broadcast %13 : vector<16x1xf32> to vector<16x32xf32>
    %15 = arith.subf %5, %14 : vector<16x32xf32>
    %16 = arith.mulf %15, %15 : vector<16x32xf32>
    %cst_10 = arith.constant dense<0.000000e+00> : vector<16xf32>
    %17 = vector.multi_reduction <add>, %16, %cst_10 [1] : vector<16x32xf32> to vector<16xf32>
    %18 = vector.shape_cast %17 : vector<16xf32> to vector<16x1xf32>
    %cst_11 = arith.constant 3.200000e+01 : f32
    %19 = vector.broadcast %cst_11 : f32 to vector<16x1xf32>
    %20 = arith.divf %18, %19 : vector<16x1xf32>
    %21 = vector.broadcast %13 : vector<16x1xf32> to vector<16x32xf32>
    %22 = arith.subf %5, %21 : vector<16x32xf32>
    %cst_12 = arith.constant 9.99999974E-6 : f32
    %23 = vector.broadcast %cst_12 : f32 to vector<16x1xf32>
    %24 = arith.addf %20, %23 : vector<16x1xf32>
    %25 = math.rsqrt %24 : vector<16x1xf32>
    %26 = vector.broadcast %25 : vector<16x1xf32> to vector<16x32xf32>
    %27 = arith.mulf %22, %26 : vector<16x32xf32>
    %28 = vector.broadcast %7 : vector<1x32xf32> to vector<16x32xf32>
    %29 = arith.mulf %27, %28 : vector<16x32xf32>
    %30 = vector.broadcast %9 : vector<1x32xf32> to vector<16x32xf32>
    %31 = arith.addf %29, %30 : vector<16x32xf32>
    %32 = arith.truncf %31 : vector<16x32xf32> to vector<16x32xbf16>
    %c0_13 = arith.constant 0 : index
    %c0_14 = arith.constant 0 : index
    %c0_15 = arith.constant 0 : index
    %33 = vector.load %arg5[%c0_13, %c0_14, %c0_15] : memref<1x96x32xbf16, #tpu.memory_space<vmem>>, vector<1x96x32xbf16>
    %34 = vector.shape_cast %33 : vector<1x96x32xbf16> to vector<96x32xbf16>
    %cst_16 = arith.constant dense<0.000000e+00> : vector<16x96xf32>
    %35 = tpu.matmul %32, %34, %cst_16 {dimension_numbers = #tpu.dot_dimension_numbers<[1], [1], [0], [0], [0, 0, 1, 0], [], []>} : vector<16x32xbf16>, vector<96x32xbf16>, vector<16x96xf32> -> vector<16x96xf32>
    %36 = arith.truncf %35 : vector<16x96xf32> to vector<16x96xbf16>
    %37 = vector.shape_cast %36 : vector<16x96xbf16> to vector<2x8x96xbf16>
    %c0_17 = arith.constant 0 : index
    %c0_18 = arith.constant 0 : index
    %38 = vector.load %arg17[%c0_17, %c0_18] : memref<8x8xf32, #tpu.memory_space<vmem>>, vector<8x8xf32>
    %cst_19 = arith.constant 0.000000e+00 : f32
    %39 = vector.broadcast %cst_19 : f32 to vector<16x32xf32>
    %40 = vector.extract_strided_slice %37 {offsets = [0, 0, 0], sizes = [2, 8, 8], strides = [1, 1, 1]} : vector<2x8x96xbf16> to vector<2x8x8xbf16>
    %41 = vector.extract_strided_slice %37 {offsets = [0, 0, 32], sizes = [2, 8, 8], strides = [1, 1, 1]} : vector<2x8x96xbf16> to vector<2x8x8xbf16>
    %42 = vector.extract_strided_slice %37 {offsets = [0, 0, 64], sizes = [2, 8, 8], strides = [1, 1, 1]} : vector<2x8x96xbf16> to vector<2x8x8xbf16>
    "tpu.trace_start"() <{level = 10 : i32, message = "bqd,bkd->bqk"}> : () -> ()
    %cst_20 = arith.constant dense<0.000000e+00> : vector<2x8x8xf32>
    %43 = tpu.matmul %40, %41, %cst_20 {dimension_numbers = #tpu.dot_dimension_numbers<[2], [2], [1], [1], [0, 0, 0, 1, 1, 1], [0], [0]>} : vector<2x8x8xbf16>, vector<2x8x8xbf16>, vector<2x8x8xf32> -> vector<2x8x8xf32>
    "tpu.trace_stop"() : () -> ()
    %cst_21 = arith.constant 0.353553385 : f32
    %44 = vector.broadcast %cst_21 : f32 to vector<2x8x8xf32>
    %45 = arith.mulf %43, %44 : vector<2x8x8xf32>
    %46 = vector.shape_cast %38 : vector<8x8xf32> to vector<1x8x8xf32>
    %47 = vector.broadcast %46 : vector<1x8x8xf32> to vector<2x8x8xf32>
    %48 = arith.addf %45, %47 : vector<2x8x8xf32>
    %cst_22 = arith.constant dense<0xFF800000> : vector<2x8xf32>
    %49 = vector.multi_reduction <maximumf>, %48, %cst_22 [2] : vector<2x8x8xf32> to vector<2x8xf32>
    %50 = vector.shape_cast %49 : vector<2x8xf32> to vector<2x8x1xf32>
    %51 = vector.broadcast %50 : vector<2x8x1xf32> to vector<2x8x8xf32>
    %52 = arith.subf %48, %51 : vector<2x8x8xf32>
    %53 = math.exp %52 : vector<2x8x8xf32>
    %cst_23 = arith.constant dense<0.000000e+00> : vector<2x8xf32>
    %54 = vector.multi_reduction <add>, %53, %cst_23 [2] : vector<2x8x8xf32> to vector<2x8xf32>
    %55 = vector.shape_cast %54 : vector<2x8xf32> to vector<2x8x1xf32>
    %56 = tpu.reciprocal %55 {approx = true} : vector<2x8x1xf32> -> vector<2x8x1xf32>
    %57 = vector.broadcast %56 : vector<2x8x1xf32> to vector<2x8x8xf32>
    %58 = arith.mulf %53, %57 : vector<2x8x8xf32>
    %59 = arith.truncf %58 : vector<2x8x8xf32> to vector<2x8x8xbf16>
    "tpu.trace_start"() <{level = 10 : i32, message = "bqk,bkd->bqd"}> : () -> ()
    %cst_24 = arith.constant dense<0.000000e+00> : vector<2x8x8xf32>
    %60 = tpu.matmul %59, %42, %cst_24 {dimension_numbers = #tpu.dot_dimension_numbers<[2], [1], [1], [2], [0, 0, 0, 1, 1, 2], [0], [0]>} : vector<2x8x8xbf16>, vector<2x8x8xbf16>, vector<2x8x8xf32> -> vector<2x8x8xf32>
    "tpu.trace_stop"() : () -> ()
    %61 = vector.shape_cast %60 : vector<2x8x8xf32> to vector<16x8xf32>
    %62 = arith.truncf %61 : vector<16x8xf32> to vector<16x8xbf16>
    %c0_25 = arith.constant 0 : index
    %c0_26 = arith.constant 0 : index
    %c0_27 = arith.constant 0 : index
    %63 = vector.load %arg6[%c0_25, %c0_26, %c0_27] : memref<1x32x32xbf16, #tpu.memory_space<vmem>>, vector<1x8x32xbf16>
    %64 = vector.shape_cast %63 : vector<1x8x32xbf16> to vector<8x32xbf16>
    %cst_28 = arith.constant dense<0.000000e+00> : vector<16x32xf32>
    %65 = tpu.matmul %62, %64, %cst_28 {dimension_numbers = #tpu.dot_dimension_numbers<[1], [0], [0], [1], [0, 0, 1, 1], [], []>} : vector<16x8xbf16>, vector<8x32xbf16>, vector<16x32xf32> -> vector<16x32xf32>
    %66 = arith.addf %39, %65 : vector<16x32xf32>
    %67 = vector.extract_strided_slice %37 {offsets = [0, 0, 8], sizes = [2, 8, 8], strides = [1, 1, 1]} : vector<2x8x96xbf16> to vector<2x8x8xbf16>
    %68 = vector.extract_strided_slice %37 {offsets = [0, 0, 40], sizes = [2, 8, 8], strides = [1, 1, 1]} : vector<2x8x96xbf16> to vector<2x8x8xbf16>
    %69 = vector.extract_strided_slice %37 {offsets = [0, 0, 72], sizes = [2, 8, 8], strides = [1, 1, 1]} : vector<2x8x96xbf16> to vector<2x8x8xbf16>
    "tpu.trace_start"() <{level = 10 : i32, message = "bqd,bkd->bqk"}> : () -> ()
    %cst_29 = arith.constant dense<0.000000e+00> : vector<2x8x8xf32>
    %70 = tpu.matmul %67, %68, %cst_29 {dimension_numbers = #tpu.dot_dimension_numbers<[2], [2], [1], [1], [0, 0, 0, 1, 1, 1], [0], [0]>} : vector<2x8x8xbf16>, vector<2x8x8xbf16>, vector<2x8x8xf32> -> vector<2x8x8xf32>
    "tpu.trace_stop"() : () -> ()
    %cst_30 = arith.constant 0.353553385 : f32
    %71 = vector.broadcast %cst_30 : f32 to vector<2x8x8xf32>
    %72 = arith.mulf %70, %71 : vector<2x8x8xf32>
    %73 = vector.shape_cast %38 : vector<8x8xf32> to vector<1x8x8xf32>
    %74 = vector.broadcast %73 : vector<1x8x8xf32> to vector<2x8x8xf32>
    %75 = arith.addf %72, %74 : vector<2x8x8xf32>
    %cst_31 = arith.constant dense<0xFF800000> : vector<2x8xf32>
    %76 = vector.multi_reduction <maximumf>, %75, %cst_31 [2] : vector<2x8x8xf32> to vector<2x8xf32>
    %77 = vector.shape_cast %76 : vector<2x8xf32> to vector<2x8x1xf32>
    %78 = vector.broadcast %77 : vector<2x8x1xf32> to vector<2x8x8xf32>
    %79 = arith.subf %75, %78 : vector<2x8x8xf32>
    %80 = math.exp %79 : vector<2x8x8xf32>
    %cst_32 = arith.constant dense<0.000000e+00> : vector<2x8xf32>
    %81 = vector.multi_reduction <add>, %80, %cst_32 [2] : vector<2x8x8xf32> to vector<2x8xf32>
    %82 = vector.shape_cast %81 : vector<2x8xf32> to vector<2x8x1xf32>
    %83 = tpu.reciprocal %82 {approx = true} : vector<2x8x1xf32> -> vector<2x8x1xf32>
    %84 = vector.broadcast %83 : vector<2x8x1xf32> to vector<2x8x8xf32>
    %85 = arith.mulf %80, %84 : vector<2x8x8xf32>
    %86 = arith.truncf %85 : vector<2x8x8xf32> to vector<2x8x8xbf16>
    "tpu.trace_start"() <{level = 10 : i32, message = "bqk,bkd->bqd"}> : () -> ()
    %cst_33 = arith.constant dense<0.000000e+00> : vector<2x8x8xf32>
    %87 = tpu.matmul %86, %69, %cst_33 {dimension_numbers = #tpu.dot_dimension_numbers<[2], [1], [1], [2], [0, 0, 0, 1, 1, 2], [0], [0]>} : vector<2x8x8xbf16>, vector<2x8x8xbf16>, vector<2x8x8xf32> -> vector<2x8x8xf32>
    "tpu.trace_stop"() : () -> ()
    %88 = vector.shape_cast %87 : vector<2x8x8xf32> to vector<16x8xf32>
    %89 = arith.truncf %88 : vector<16x8xf32> to vector<16x8xbf16>
    %c0_34 = arith.constant 0 : index
    %c8 = arith.constant 8 : index
    %c0_35 = arith.constant 0 : index
    %90 = vector.load %arg6[%c0_34, %c8, %c0_35] : memref<1x32x32xbf16, #tpu.memory_space<vmem>>, vector<1x8x32xbf16>
    %91 = vector.shape_cast %90 : vector<1x8x32xbf16> to vector<8x32xbf16>
    %cst_36 = arith.constant dense<0.000000e+00> : vector<16x32xf32>
    %92 = tpu.matmul %89, %91, %cst_36 {dimension_numbers = #tpu.dot_dimension_numbers<[1], [0], [0], [1], [0, 0, 1, 1], [], []>} : vector<16x8xbf16>, vector<8x32xbf16>, vector<16x32xf32> -> vector<16x32xf32>
    %93 = arith.addf %66, %92 : vector<16x32xf32>
    %94 = vector.extract_strided_slice %37 {offsets = [0, 0, 16], sizes = [2, 8, 8], strides = [1, 1, 1]} : vector<2x8x96xbf16> to vector<2x8x8xbf16>
    %95 = vector.extract_strided_slice %37 {offsets = [0, 0, 48], sizes = [2, 8, 8], strides = [1, 1, 1]} : vector<2x8x96xbf16> to vector<2x8x8xbf16>
    %96 = vector.extract_strided_slice %37 {offsets = [0, 0, 80], sizes = [2, 8, 8], strides = [1, 1, 1]} : vector<2x8x96xbf16> to vector<2x8x8xbf16>
    "tpu.trace_start"() <{level = 10 : i32, message = "bqd,bkd->bqk"}> : () -> ()
    %cst_37 = arith.constant dense<0.000000e+00> : vector<2x8x8xf32>
    %97 = tpu.matmul %94, %95, %cst_37 {dimension_numbers = #tpu.dot_dimension_numbers<[2], [2], [1], [1], [0, 0, 0, 1, 1, 1], [0], [0]>} : vector<2x8x8xbf16>, vector<2x8x8xbf16>, vector<2x8x8xf32> -> vector<2x8x8xf32>
    "tpu.trace_stop"() : () -> ()
    %cst_38 = arith.constant 0.353553385 : f32
    %98 = vector.broadcast %cst_38 : f32 to vector<2x8x8xf32>
    %99 = arith.mulf %97, %98 : vector<2x8x8xf32>
    %100 = vector.shape_cast %38 : vector<8x8xf32> to vector<1x8x8xf32>
    %101 = vector.broadcast %100 : vector<1x8x8xf32> to vector<2x8x8xf32>
    %102 = arith.addf %99, %101 : vector<2x8x8xf32>
    %cst_39 = arith.constant dense<0xFF800000> : vector<2x8xf32>
    %103 = vector.multi_reduction <maximumf>, %102, %cst_39 [2] : vector<2x8x8xf32> to vector<2x8xf32>
    %104 = vector.shape_cast %103 : vector<2x8xf32> to vector<2x8x1xf32>
    %105 = vector.broadcast %104 : vector<2x8x1xf32> to vector<2x8x8xf32>
    %106 = arith.subf %102, %105 : vector<2x8x8xf32>
    %107 = math.exp %106 : vector<2x8x8xf32>
    %cst_40 = arith.constant dense<0.000000e+00> : vector<2x8xf32>
    %108 = vector.multi_reduction <add>, %107, %cst_40 [2] : vector<2x8x8xf32> to vector<2x8xf32>
    %109 = vector.shape_cast %108 : vector<2x8xf32> to vector<2x8x1xf32>
    %110 = tpu.reciprocal %109 {approx = true} : vector<2x8x1xf32> -> vector<2x8x1xf32>
    %111 = vector.broadcast %110 : vector<2x8x1xf32> to vector<2x8x8xf32>
    %112 = arith.mulf %107, %111 : vector<2x8x8xf32>
    %113 = arith.truncf %112 : vector<2x8x8xf32> to vector<2x8x8xbf16>
    "tpu.trace_start"() <{level = 10 : i32, message = "bqk,bkd->bqd"}> : () -> ()
    %cst_41 = arith.constant dense<0.000000e+00> : vector<2x8x8xf32>
    %114 = tpu.matmul %113, %96, %cst_41 {dimension_numbers = #tpu.dot_dimension_numbers<[2], [1], [1], [2], [0, 0, 0, 1, 1, 2], [0], [0]>} : vector<2x8x8xbf16>, vector<2x8x8xbf16>, vector<2x8x8xf32> -> vector<2x8x8xf32>
    "tpu.trace_stop"() : () -> ()
    %115 = vector.shape_cast %114 : vector<2x8x8xf32> to vector<16x8xf32>
    %116 = arith.truncf %115 : vector<16x8xf32> to vector<16x8xbf16>
    %c0_42 = arith.constant 0 : index
    %c16 = arith.constant 16 : index
    %c0_43 = arith.constant 0 : index
    %117 = vector.load %arg6[%c0_42, %c16, %c0_43] : memref<1x32x32xbf16, #tpu.memory_space<vmem>>, vector<1x8x32xbf16>
    %118 = vector.shape_cast %117 : vector<1x8x32xbf16> to vector<8x32xbf16>
    %cst_44 = arith.constant dense<0.000000e+00> : vector<16x32xf32>
    %119 = tpu.matmul %116, %118, %cst_44 {dimension_numbers = #tpu.dot_dimension_numbers<[1], [0], [0], [1], [0, 0, 1, 1], [], []>} : vector<16x8xbf16>, vector<8x32xbf16>, vector<16x32xf32> -> vector<16x32xf32>
    %120 = arith.addf %93, %119 : vector<16x32xf32>
    %121 = vector.extract_strided_slice %37 {offsets = [0, 0, 24], sizes = [2, 8, 8], strides = [1, 1, 1]} : vector<2x8x96xbf16> to vector<2x8x8xbf16>
    %122 = vector.extract_strided_slice %37 {offsets = [0, 0, 56], sizes = [2, 8, 8], strides = [1, 1, 1]} : vector<2x8x96xbf16> to vector<2x8x8xbf16>
    %123 = vector.extract_strided_slice %37 {offsets = [0, 0, 88], sizes = [2, 8, 8], strides = [1, 1, 1]} : vector<2x8x96xbf16> to vector<2x8x8xbf16>
    "tpu.trace_start"() <{level = 10 : i32, message = "bqd,bkd->bqk"}> : () -> ()
    %cst_45 = arith.constant dense<0.000000e+00> : vector<2x8x8xf32>
    %124 = tpu.matmul %121, %122, %cst_45 {dimension_numbers = #tpu.dot_dimension_numbers<[2], [2], [1], [1], [0, 0, 0, 1, 1, 1], [0], [0]>} : vector<2x8x8xbf16>, vector<2x8x8xbf16>, vector<2x8x8xf32> -> vector<2x8x8xf32>
    "tpu.trace_stop"() : () -> ()
    %cst_46 = arith.constant 0.353553385 : f32
    %125 = vector.broadcast %cst_46 : f32 to vector<2x8x8xf32>
    %126 = arith.mulf %124, %125 : vector<2x8x8xf32>
    %127 = vector.shape_cast %38 : vector<8x8xf32> to vector<1x8x8xf32>
    %128 = vector.broadcast %127 : vector<1x8x8xf32> to vector<2x8x8xf32>
    %129 = arith.addf %126, %128 : vector<2x8x8xf32>
    %cst_47 = arith.constant dense<0xFF800000> : vector<2x8xf32>
    %130 = vector.multi_reduction <maximumf>, %129, %cst_47 [2] : vector<2x8x8xf32> to vector<2x8xf32>
    %131 = vector.shape_cast %130 : vector<2x8xf32> to vector<2x8x1xf32>
    %132 = vector.broadcast %131 : vector<2x8x1xf32> to vector<2x8x8xf32>
    %133 = arith.subf %129, %132 : vector<2x8x8xf32>
    %134 = math.exp %133 : vector<2x8x8xf32>
    %cst_48 = arith.constant dense<0.000000e+00> : vector<2x8xf32>
    %135 = vector.multi_reduction <add>, %134, %cst_48 [2] : vector<2x8x8xf32> to vector<2x8xf32>
    %136 = vector.shape_cast %135 : vector<2x8xf32> to vector<2x8x1xf32>
    %137 = tpu.reciprocal %136 {approx = true} : vector<2x8x1xf32> -> vector<2x8x1xf32>
    %138 = vector.broadcast %137 : vector<2x8x1xf32> to vector<2x8x8xf32>
    %139 = arith.mulf %134, %138 : vector<2x8x8xf32>
    %140 = arith.truncf %139 : vector<2x8x8xf32> to vector<2x8x8xbf16>
    "tpu.trace_start"() <{level = 10 : i32, message = "bqk,bkd->bqd"}> : () -> ()
    %cst_49 = arith.constant dense<0.000000e+00> : vector<2x8x8xf32>
    %141 = tpu.matmul %140, %123, %cst_49 {dimension_numbers = #tpu.dot_dimension_numbers<[2], [1], [1], [2], [0, 0, 0, 1, 1, 2], [0], [0]>} : vector<2x8x8xbf16>, vector<2x8x8xbf16>, vector<2x8x8xf32> -> vector<2x8x8xf32>
    "tpu.trace_stop"() : () -> ()
    %142 = vector.shape_cast %141 : vector<2x8x8xf32> to vector<16x8xf32>
    %143 = arith.truncf %142 : vector<16x8xf32> to vector<16x8xbf16>
    %c0_50 = arith.constant 0 : index
    %c24 = arith.constant 24 : index
    %c0_51 = arith.constant 0 : index
    %144 = vector.load %arg6[%c0_50, %c24, %c0_51] : memref<1x32x32xbf16, #tpu.memory_space<vmem>>, vector<1x8x32xbf16>
    %145 = vector.shape_cast %144 : vector<1x8x32xbf16> to vector<8x32xbf16>
    %cst_52 = arith.constant dense<0.000000e+00> : vector<16x32xf32>
    %146 = tpu.matmul %143, %145, %cst_52 {dimension_numbers = #tpu.dot_dimension_numbers<[1], [0], [0], [1], [0, 0, 1, 1], [], []>} : vector<16x8xbf16>, vector<8x32xbf16>, vector<16x32xf32> -> vector<16x32xf32>
    %147 = arith.addf %120, %146 : vector<16x32xf32>
    %148 = arith.addf %5, %147 : vector<16x32xf32>
    %c0_53 = arith.constant 0 : index
    %c0_54 = arith.constant 0 : index
    %c0_55 = arith.constant 0 : index
    %149 = vector.load %arg7[%c0_53, %c0_54, %c0_55] : memref<1x1x32xf32, #tpu.memory_space<vmem>>, vector<1x1x32xf32>
    %150 = vector.shape_cast %149 : vector<1x1x32xf32> to vector<1x32xf32>
    %151 = vector.broadcast %150 : vector<1x32xf32> to vector<16x32xf32>
    %152 = arith.addf %148, %151 : vector<16x32xf32>
    %c0_56 = arith.constant 0 : index
    %c0_57 = arith.constant 0 : index
    %c0_58 = arith.constant 0 : index
    %153 = vector.load %arg8[%c0_56, %c0_57, %c0_58] : memref<1x1x32xf32, #tpu.memory_space<vmem>>, vector<1x1x32xf32>
    %154 = vector.shape_cast %153 : vector<1x1x32xf32> to vector<1x32xf32>
    %c0_59 = arith.constant 0 : index
    %c0_60 = arith.constant 0 : index
    %c0_61 = arith.constant 0 : index
    %155 = vector.load %arg9[%c0_59, %c0_60, %c0_61] : memref<1x1x32xf32, #tpu.memory_space<vmem>>, vector<1x1x32xf32>
    %156 = vector.shape_cast %155 : vector<1x1x32xf32> to vector<1x32xf32>
    %cst_62 = arith.constant dense<0.000000e+00> : vector<16xf32>
    %157 = vector.multi_reduction <add>, %152, %cst_62 [1] : vector<16x32xf32> to vector<16xf32>
    %158 = vector.shape_cast %157 : vector<16xf32> to vector<16x1xf32>
    %cst_63 = arith.constant 3.200000e+01 : f32
    %159 = vector.broadcast %cst_63 : f32 to vector<16x1xf32>
    %160 = arith.divf %158, %159 : vector<16x1xf32>
    %161 = vector.broadcast %160 : vector<16x1xf32> to vector<16x32xf32>
    %162 = arith.subf %152, %161 : vector<16x32xf32>
    %163 = arith.mulf %162, %162 : vector<16x32xf32>
    %cst_64 = arith.constant dense<0.000000e+00> : vector<16xf32>
    %164 = vector.multi_reduction <add>, %163, %cst_64 [1] : vector<16x32xf32> to vector<16xf32>
    %165 = vector.shape_cast %164 : vector<16xf32> to vector<16x1xf32>
    %cst_65 = arith.constant 3.200000e+01 : f32
    %166 = vector.broadcast %cst_65 : f32 to vector<16x1xf32>
    %167 = arith.divf %165, %166 : vector<16x1xf32>
    %168 = vector.broadcast %160 : vector<16x1xf32> to vector<16x32xf32>
    %169 = arith.subf %152, %168 : vector<16x32xf32>
    %cst_66 = arith.constant 9.99999974E-6 : f32
    %170 = vector.broadcast %cst_66 : f32 to vector<16x1xf32>
    %171 = arith.addf %167, %170 : vector<16x1xf32>
    %172 = math.rsqrt %171 : vector<16x1xf32>
    %173 = vector.broadcast %172 : vector<16x1xf32> to vector<16x32xf32>
    %174 = arith.mulf %169, %173 : vector<16x32xf32>
    %175 = vector.broadcast %154 : vector<1x32xf32> to vector<16x32xf32>
    %176 = arith.mulf %174, %175 : vector<16x32xf32>
    %177 = vector.broadcast %156 : vector<1x32xf32> to vector<16x32xf32>
    %178 = arith.addf %176, %177 : vector<16x32xf32>
    %179 = arith.truncf %178 : vector<16x32xf32> to vector<16x32xbf16>
    %cst_67 = arith.constant 0.000000e+00 : f32
    %180 = vector.broadcast %cst_67 : f32 to vector<16x32xf32>
    %c0_68 = arith.constant 0 : index
    %c0_69 = arith.constant 0 : index
    %c0_70 = arith.constant 0 : index
    %181 = vector.load %arg10[%c0_68, %c0_69, %c0_70] : memref<1x32x128xbf16, #tpu.memory_space<vmem>>, vector<1x32x128xbf16>
    %182 = vector.shape_cast %181 : vector<1x32x128xbf16> to vector<32x128xbf16>
    %cst_71 = arith.constant dense<0.000000e+00> : vector<16x128xf32>
    %183 = tpu.matmul %179, %182, %cst_71 {dimension_numbers = #tpu.dot_dimension_numbers<[1], [0], [0], [1], [0, 0, 1, 1], [], []>} : vector<16x32xbf16>, vector<32x128xbf16>, vector<16x128xf32> -> vector<16x128xf32>
    %c0_72 = arith.constant 0 : index
    %c0_73 = arith.constant 0 : index
    %c0_74 = arith.constant 0 : index
    %184 = vector.load %arg11[%c0_72, %c0_73, %c0_74] : memref<1x1x128xf32, #tpu.memory_space<vmem>>, vector<1x1x128xf32>
    %185 = vector.shape_cast %184 : vector<1x1x128xf32> to vector<1x128xf32>
    %186 = vector.broadcast %185 : vector<1x128xf32> to vector<16x128xf32>
    %187 = arith.addf %183, %186 : vector<16x128xf32>
    %cst_75 = arith.constant 0.000000e+00 : f32
    %188 = vector.broadcast %cst_75 : f32 to vector<16x128xf32>
    %189 = arith.maximumf %187, %188 : vector<16x128xf32>
    %190 = arith.truncf %189 : vector<16x128xf32> to vector<16x128xbf16>
    %c0_76 = arith.constant 0 : index
    %c0_77 = arith.constant 0 : index
    %c0_78 = arith.constant 0 : index
    %191 = vector.load %arg12[%c0_76, %c0_77, %c0_78] : memref<1x128x32xbf16, #tpu.memory_space<vmem>>, vector<1x128x32xbf16>
    %192 = vector.shape_cast %191 : vector<1x128x32xbf16> to vector<128x32xbf16>
    %cst_79 = arith.constant dense<0.000000e+00> : vector<16x32xf32>
    %193 = tpu.matmul %190, %192, %cst_79 {dimension_numbers = #tpu.dot_dimension_numbers<[1], [0], [0], [1], [0, 0, 1, 1], [], []>} : vector<16x128xbf16>, vector<128x32xbf16>, vector<16x32xf32> -> vector<16x32xf32>
    %194 = arith.addf %180, %193 : vector<16x32xf32>
    %195 = arith.addf %152, %194 : vector<16x32xf32>
    %c0_80 = arith.constant 0 : index
    %c0_81 = arith.constant 0 : index
    %c0_82 = arith.constant 0 : index
    %196 = vector.load %arg13[%c0_80, %c0_81, %c0_82] : memref<1x1x32xf32, #tpu.memory_space<vmem>>, vector<1x1x32xf32>
    %197 = vector.shape_cast %196 : vector<1x1x32xf32> to vector<1x32xf32>
    %198 = vector.broadcast %197 : vector<1x32xf32> to vector<16x32xf32>
    %199 = arith.addf %195, %198 : vector<16x32xf32>
    %c1_i32 = arith.constant 1 : i32
    %200 = arith.cmpi slt, %arg1, %c1_i32 : i32
    %201 = arith.extui %200 : i1 to i32
    %c0_i32_83 = arith.constant 0 : i32
    %202 = arith.cmpi ne, %201, %c0_i32_83 : i32
    scf.if %202 {
      %206 = arith.truncf %199 : vector<16x32xf32> to vector<16x32xbf16>
      %207 = vector.shape_cast %206 : vector<16x32xbf16> to vector<2x8x32xbf16>
      %c0_86 = arith.constant 0 : index
      %c0_87 = arith.constant 0 : index
      %c0_88 = arith.constant 0 : index
      %208 = vector.load %arg16[%c0_86, %c0_87, %c0_88] : memref<2x8x32xbf16, #tpu.memory_space<vmem>>, vector<2x8x32xbf16>
      tpu.vector_store %arg16[%c0_86, %c0_87, %c0_88], %207 {strides = array<i32>} : memref<2x8x32xbf16, #tpu.memory_space<vmem>>, vector<2x8x32xbf16>,
    } else {
    }
    %c1_i32_84 = arith.constant 1 : i32
    %203 = arith.cmpi eq, %arg1, %c1_i32_84 : i32
    %204 = arith.extui %203 : i1 to i32
    %c0_i32_85 = arith.constant 0 : i32
    %205 = arith.cmpi ne, %204, %c0_i32_85 : i32
    scf.if %205 {
      %c0_86 = arith.constant 0 : index
      %c0_87 = arith.constant 0 : index
      %206 = vector.load %arg14[%c0_86, %c0_87] : memref<1x32xf32, #tpu.memory_space<vmem>>, vector<1x32xf32>
      %c0_88 = arith.constant 0 : index
      %c0_89 = arith.constant 0 : index
      %207 = vector.load %arg15[%c0_88, %c0_89] : memref<1x32xf32, #tpu.memory_space<vmem>>, vector<1x32xf32>
      %cst_90 = arith.constant dense<0.000000e+00> : vector<16xf32>
      %208 = vector.multi_reduction <add>, %199, %cst_90 [1] : vector<16x32xf32> to vector<16xf32>
      %209 = vector.shape_cast %208 : vector<16xf32> to vector<16x1xf32>
      %cst_91 = arith.constant 3.200000e+01 : f32
      %210 = vector.broadcast %cst_91 : f32 to vector<16x1xf32>
      %211 = arith.divf %209, %210 : vector<16x1xf32>
      %212 = vector.broadcast %211 : vector<16x1xf32> to vector<16x32xf32>
      %213 = arith.subf %199, %212 : vector<16x32xf32>
      %214 = arith.mulf %213, %213 : vector<16x32xf32>
      %cst_92 = arith.constant dense<0.000000e+00> : vector<16xf32>
      %215 = vector.multi_reduction <add>, %214, %cst_92 [1] : vector<16x32xf32> to vector<16xf32>
      %216 = vector.shape_cast %215 : vector<16xf32> to vector<16x1xf32>
      %cst_93 = arith.constant 3.200000e+01 : f32
      %217 = vector.broadcast %cst_93 : f32 to vector<16x1xf32>
      %218 = arith.divf %216, %217 : vector<16x1xf32>
      %219 = vector.broadcast %211 : vector<16x1xf32> to vector<16x32xf32>
      %220 = arith.subf %199, %219 : vector<16x32xf32>
      %cst_94 = arith.constant 9.99999974E-6 : f32
      %221 = vector.broadcast %cst_94 : f32 to vector<16x1xf32>
      %222 = arith.addf %218, %221 : vector<16x1xf32>
      %223 = math.rsqrt %222 : vector<16x1xf32>
      %224 = vector.broadcast %223 : vector<16x1xf32> to vector<16x32xf32>
      %225 = arith.mulf %220, %224 : vector<16x32xf32>
      %226 = vector.broadcast %206 : vector<1x32xf32> to vector<16x32xf32>
      %227 = arith.mulf %225, %226 : vector<16x32xf32>
      %228 = vector.broadcast %207 : vector<1x32xf32> to vector<16x32xf32>
      %229 = arith.addf %227, %228 : vector<16x32xf32>
      %230 = arith.truncf %229 : vector<16x32xf32> to vector<16x32xbf16>
      %231 = vector.shape_cast %230 : vector<16x32xbf16> to vector<2x8x32xbf16>
      %c0_95 = arith.constant 0 : index
      %c0_96 = arith.constant 0 : index
      %c0_97 = arith.constant 0 : index
      %232 = vector.load %arg16[%c0_95, %c0_96, %c0_97] : memref<2x8x32xbf16, #tpu.memory_space<vmem>>, vector<2x8x32xbf16>
      tpu.vector_store %arg16[%c0_95, %c0_96, %c0_97], %231 {strides = array<i32>} : memref<2x8x32xbf16, #tpu.memory_space<vmem>>, vector<2x8x32xbf16>,
    } else {
    }
    return
  }
  func.func @transform_0(%arg0: i32, %arg1: i32) -> (i32, i32, i32) {
    %c0_i32 = arith.constant 0 : i32
    %c0_i32_0 = arith.constant 0 : i32
    %c0_i32_1 = arith.constant 0 : i32
    return %arg0, %c0_i32, %c0_i32_0 : i32, i32, i32
  }
  func.func @transform_1(%arg0: i32, %arg1: i32) -> (i32, i32, i32) {
    %c0_i32 = arith.constant 0 : i32
    %c0_i32_0 = arith.constant 0 : i32
    %c0_i32_1 = arith.constant 0 : i32
    return %arg1, %c0_i32, %c0_i32_0 : i32, i32, i32
  }
  func.func @transform_2(%arg0: i32, %arg1: i32) -> (i32, i32, i32) {
    %c0_i32 = arith.constant 0 : i32
    %c0_i32_0 = arith.constant 0 : i32
    %c0_i32_1 = arith.constant 0 : i32
    return %arg1, %c0_i32, %c0_i32_0 : i32, i32, i32
  }
  func.func @transform_3(%arg0: i32, %arg1: i32) -> (i32, i32, i32) {
    %c0_i32 = arith.constant 0 : i32
    %c0_i32_0 = arith.constant 0 : i32
    %c0_i32_1 = arith.constant 0 : i32
    return %arg1, %c0_i32, %c0_i32_0 : i32, i32, i32
  }
  func.func @transform_4(%arg0: i32, %arg1: i32) -> (i32, i32, i32) {
    %c0_i32 = arith.constant 0 : i32
    %c0_i32_0 = arith.constant 0 : i32
    %c0_i32_1 = arith.constant 0 : i32
    return %arg1, %c0_i32, %c0_i32_0 : i32, i32, i32
  }
  func.func @transform_5(%arg0: i32, %arg1: i32) -> (i32, i32, i32) {
    %c0_i32 = arith.constant 0 : i32
    %c0_i32_0 = arith.constant 0 : i32
    %c0_i32_1 = arith.constant 0 : i32
    return %arg1, %c0_i32, %c0_i32_0 : i32, i32, i32
  }
  func.func @transform_6(%arg0: i32, %arg1: i32) -> (i32, i32, i32) {
    %c0_i32 = arith.constant 0 : i32
    %c0_i32_0 = arith.constant 0 : i32
    %c0_i32_1 = arith.constant 0 : i32
    return %arg1, %c0_i32, %c0_i32_0 : i32, i32, i32
  }
  func.func @transform_7(%arg0: i32, %arg1: i32) -> (i32, i32, i32) {
    %c0_i32 = arith.constant 0 : i32
    %c0_i32_0 = arith.constant 0 : i32
    %c0_i32_1 = arith.constant 0 : i32
    return %arg1, %c0_i32, %c0_i32_0 : i32, i32, i32
  }
  func.func @transform_8(%arg0: i32, %arg1: i32) -> (i32, i32, i32) {
    %c0_i32 = arith.constant 0 : i32
    %c0_i32_0 = arith.constant 0 : i32
    %c0_i32_1 = arith.constant 0 : i32
    return %arg1, %c0_i32, %c0_i32_0 : i32, i32, i32
  }
  func.func @transform_9(%arg0: i32, %arg1: i32) -> (i32, i32, i32) {
    %c0_i32 = arith.constant 0 : i32
    %c0_i32_0 = arith.constant 0 : i32
    %c0_i32_1 = arith.constant 0 : i32
    return %arg1, %c0_i32, %c0_i32_0 : i32, i32, i32
  }
  func.func @transform_10(%arg0: i32, %arg1: i32) -> (i32, i32, i32) {
    %c0_i32 = arith.constant 0 : i32
    %c0_i32_0 = arith.constant 0 : i32
    %c0_i32_1 = arith.constant 0 : i32
    return %arg1, %c0_i32, %c0_i32_0 : i32, i32, i32
  }
  func.func @transform_11(%arg0: i32, %arg1: i32) -> (i32, i32, i32) {
    %c0_i32 = arith.constant 0 : i32
    %c0_i32_0 = arith.constant 0 : i32
    %c0_i32_1 = arith.constant 0 : i32
    return %arg1, %c0_i32, %c0_i32_0 : i32, i32, i32
  }
  func.func @transform_12(%arg0: i32, %arg1: i32) -> (i32, i32) {
    %c0_i32 = arith.constant 0 : i32
    %c0_i32_0 = arith.constant 0 : i32
    %c0_i32_1 = arith.constant 0 : i32
    return %c0_i32, %c0_i32_0 : i32, i32
  }
  func.func @transform_13(%arg0: i32, %arg1: i32) -> (i32, i32) {
    %c0_i32 = arith.constant 0 : i32
    %c0_i32_0 = arith.constant 0 : i32
    %c0_i32_1 = arith.constant 0 : i32
    return %c0_i32, %c0_i32_0 : i32, i32
  }
  func.func @transform_14(%arg0: i32, %arg1: i32) -> (i32, i32, i32) {
    %c0_i32 = arith.constant 0 : i32
    %c0_i32_0 = arith.constant 0 : i32
    %c0_i32_1 = arith.constant 0 : i32
    return %arg0, %c0_i32, %c0_i32_0 : i32, i32, i32
  }
}

</mosaic_0001>

<bundles_post_ra>
// kernel: language_model_forward.3
= control target key start
LH: loop header
LB: loop body
LE: loop exit
PB: predicated region body
PF: predicated region fallthrough
CT: control target
= control target key end

     0   :  { %v156_v1 = vmov 0.0   ;;  %vm157_vm0 = vmmov 0   ;;  %s196_s0 = inlined_call_operand.vmem [shape: bf16[16,32], index: 0, kind: input, shape index: {}]   ;;  %s197_s1 = inlined_call_operand.vmem [shape: bf16[32,64], index: 1, kind: input, shape index: {}]   ;;  %s198_s2 = inlined_call_operand.vmem [shape: f32[1,64], index: 2, kind: input, shape index: {}]   ;;  %s199_s3 = inlined_call_operand.hbm [shape: f32[16,64], index: 3, kind: output, shape index: {}]  }
   0x1   :  { %v131_v0 = vld [vmem:[%s197_s1 + $0x8] sm:$0xff]   ;;  %118 = vmatprep.subr.bf16.mxu0 %v156_v1  ;;  %v132_v2 = vld [vmem:[%s197_s1] sm:$0xff]   ;;  %122 = vmatprep.mubr.msk.bf16.mxu0 %vm157_vm0, %v156_v1 }
   0x2   :  { %119 = vmatpush3.bf16.msra.mxu0 %v131_v0 }
   0x3   :  { %120 = vmatprep.subr.bf16.mxu0 %v156_v1 }
   0x4   :  { %8 = vsyncpa [#allocation3], 0  ;;  %v133_v3 = vld [vmem:[%s196_s0] sm:$0xff]   ;;  %vm46_vm1 = vcmask 261120   ;;  %vm91_vm2 = vcmask 523264   ;;  %s158_s20 = smov [#allocation2]  }
   0x5   :  { %v110_v4 = vld [vmem:[%s198_s2] ss:$0 sm:$0xff]  ;;  %s99_s1 = sshll.u32 %s158_s20, 4  ;;  %s100_s1 = int_to_ptr.vmem [resolvable:$true] %s99_s1 }
   0x6   :  { %121 = vmatpush3.bf16.msra.mxu0 %v132_v2  ;;  %s134_s0 = scalar_lea.vmem %s100_s1, 256  ;;  %p139_p1 = scmp.lt.s32.totalorder %s100_s1, %s100_s1 }
   0x7   :  { %p135_p0 = scmp.ne.s32.totalorder %s100_s1, %s134_s0  ;;  %p140_p2 = scmp.lt.s32.totalorder %s134_s0, %s134_s0 }
   0x9   :  { %123 = vmatmul.mubr.msk.bf16.vlgmr.msra.gmra.mxu0 %vm46_vm1, %v133_v3  ;;  %p141_p3 = por %p140_p2, %p139_p1 }
   0xb   :  { %p142_p4 = pnand %p141_p3, %p135_p0 }
  0xc9   :  { %v84_v5 = vpop.f32.mrf.mxu0 }
  0xca   :  { %v85_v6 = vadd.f32 %v110_v4, %v84_v5 }
  0xcb   :  { %v124_v7 = vpop.f32.mrf.mxu0 }
  0xcc   :  { %92 = vst.msk [vmem:[#allocation2] sm:$0xff] %vm91_vm2, %v85_v6 }
  0xcd   :  { %v87_v8 = vpop.f32.mrf.mxu0 }
  0xce   :  { %v88_v9 = vadd.f32 %v110_v4, %v87_v8 }
  0xcf   :  { %v125_v10 = vpop.f32.mrf.mxu0 }
  0xd0   :  { %93 = vst.msk [vmem:[#allocation2 + $0x8] sm:$0xff] %vm91_vm2, %v88_v9 }
  0xd1   :  { %145 = shalt.err (!%p142_p4)
}
  0xd2   :  { %s159_s2 = smov 128   ;;  %s160_s21 = smov 8  }
  0xd3   :  { %105 = dma.vmem_to_hbm [thread:$0]  %s100_s1, 256, %s199_s3, [#allocation3], %s159_s2, %s159_s2, %s160_s21  }
  0xd4   :  { %154 = dma.done.wait [#allocation3], 256  }
  0xd5   :  { %155 = vsyncadd [#allocation3], 4294967040 }
  0xd6   :  { %109 = vsyncpa [#allocation3], 1 }

// kernel: language_model_forward.2
= control target key start
LH: loop header
LB: loop body
LE: loop exit
PB: predicated region body
PF: predicated region fallthrough
CT: control target
= control target key end

     0   :  { %s2947_s29 = smov 0   ;;  %s2949_s30 = smov 0   ;;  %s3366_s0 = inlined_call_operand.vmem [shape: bf16[2,8,32], index: 0, kind: input, shape index: {}]   ;;  %s3367_s1 = inlined_call_operand.vmem [shape: f32[2,1,32], index: 1, kind: input, shape index: {}]   ;;  %s3368_s2 = inlined_call_operand.vmem [shape: f32[2,1,32], index: 2, kind: input, shape index: {}]   ;;  %s3369_s3 = inlined_call_operand.vmem [shape: bf16[2,96,32], index: 3, kind: input, shape index: {}]   ;;  %s3370_s4 = inlined_call_operand.vmem [shape: bf16[2,32,32], index: 4, kind: input, shape index: {}]   ;;  %s3371_s5 = inlined_call_operand.vmem [shape: f32[2,1,32], index: 5, kind: input, shape index: {}]   ;;  %s3372_s6 = inlined_call_operand.vmem [shape: f32[2,1,32], index: 6, kind: input, shape index: {}]   ;;  %s3373_s7 = inlined_call_operand.vmem [shape: f32[2,1,32], index: 7, kind: input, shape index: {}]   ;;  %s3374_s8 = inlined_call_operand.vmem [shape: bf16[2,32,128], index: 8, kind: input, shape index: {}]   ;;  %s3375_s9 = inlined_call_operand.vmem [shape: f32[2,1,128], index: 9, kind: input, shape index: {}]   ;;  %s3376_s10 = inlined_call_operand.vmem [shape: bf16[2,128,32], index: 10, kind: input, shape index: {}]   ;;  %s3377_s11 = inlined_call_operand.vmem [shape: f32[2,1,32], index: 11, kind: input, shape index: {}]   ;;  %s3378_s12 = inlined_call_operand.vmem [shape: f32[1,32], index: 12, kind: input, shape index: {}]   ;;  %s3379_s13 = inlined_call_operand.vmem [shape: f32[1,32], index: 13, kind: input, shape index: {}]   ;;  %s3380_s14 = inlined_call_operand.vmem [shape: bf16[2,8,32], index: 14, kind: output, shape index: {}]  }
   0x1   :  { %3383 = sst [smem:[#allocation6_spill]] %s3368_s2  ;;  %s2951_s15 = smov 0  }
   0x2   :  { %3384 = sst [smem:[#allocation7_spill]] %s3369_s3 }
   0x3   :  { %3385 = sst [smem:[#allocation8_spill]] %s3370_s4 }
   0x4   :  { %3386 = sst [smem:[#allocation9_spill]] %s3378_s12 }
   0x5   :  { %3387 = sst [smem:[#allocation10_spill]] %s3379_s13 }
   0x6 LB: > { %3388 = sst [smem:[#allocation3_spill]] %s2852_s30  ;;  %s33_s16 = sadd.s32 1, %s2852_s30  ;;  %s2856_s15 = sphi %s2951_s15, %s24_s15   ;;  %s2852_s30 = sphi %s2949_s30, %s3402_s30   ;;  %s2848_s29 = sphi %s2947_s29, %s3401_s29  }
   0x7   : > { %3389 = sst [smem:[#allocation4_spill]] %s2856_s15  ;;  %p2431_p0 = scmp.ge.s32.totalorder %s2856_s15, 1 }
   0x8   : > { %p34_p1 = scmp.ge.s32.totalorder %s33_s16, 2  ;;  %p521_p2 = scmp.lt.s32.totalorder %s2856_s15, 3 }
   0xa   : > { %s3404_s16 = smov (%p34_p1, %s33_s16), 0  ;;  %p522_p3 = pnand %p2431_p0, %p521_p2 }
   0xb   : > { %3390 = sst [smem:[#allocation5_spill]] %s3404_s16  ;;  %p614_p4 = scmp.lt.s32.totalorder (!%p522_p3), %s2848_s29, 1 }
   0xc   : > { %525 = sbr.rel (%p522_p3) target bundleno = 4583 (0x11e7), region = 76  ;;  %s3392_s4 = sld [smem:[#allocation8_spill]] (!%p522_p3) }
   0xd   : > { %s3393_s3 = sld [smem:[#allocation7_spill]] (!%p522_p3)  ;;  %p2439_p5 = scmp.ne.s32.totalorder (!%p522_p3), %s2848_s29, 0 }
  0x11   : > { %s2969_s17 = scalar_select %p614_p4, %s2848_s29, 1 }
  0x13   : > { %s2735_s24 = smul.u32 48, %s2969_s17  ;;  %s2499_s25 = sshll.u32 %s2969_s17, 4 }
  0x14   : > { %s2984_s28 = scalar_lea.vmem %s3392_s4, %s2499_s25  ;;  %s635_s21 = scalar_lea.vmem %s3372_s6, %s2969_s17 }
  0x15   : > { %s2993_s13 = scalar_lea.vmem %s3393_s3, %s2735_s24  ;;  %s638_s2 = scalar_lea.vmem %s3373_s7, %s2969_s17 }
  0x16   : > { %s3006_s4 = scalar_lea.vmem %s3374_s8, %s2499_s25  ;;  %s646_s16 = scalar_lea.vmem %s3375_s9, %s2969_s17 }
  0x17   : > { %s2501_s30 = sshll.u32 %s2969_s17, 6  ;;  %s654_s23 = scalar_lea.vmem %s3377_s11, %s2969_s17 }
  0x18   : > { %s3016_s3 = scalar_lea.vmem %s3376_s10, %s2501_s30  ;;  %665 = sbr.rel (%p2439_p5) target bundleno = 36 (0x24), region = 80 }
  0x1d   : > { %v666_v0 = vld [vmem:[%s3366_s0] sm:$0xf]  ;;  %vm668_vm0 = vcmask 257024   ;;  %v667_v1 = vld [vmem:[%s3366_s0 + $0x4] sm:$0xf]  ;;  %v671_v2 = vlaneseq  ;;  %vm677_vm1 = vcmask 64512  }
  0x1e   : > { %669 = vst.msk [vmem:[%s3380_s14] sm:$0xf] %vm668_vm0, %v666_v0  ;;  %670 = vst.msk [vmem:[%s3380_s14 + $0x4] sm:$0xf] %vm668_vm0, %v667_v1  ;;  %v2858_v5 = vmov -1e+30  }
  0x1f   : > { %v672_v3 = vshrl.u32 %v671_v2, 7  ;;  %v674_v4 = vand.u32 127, %v671_v2 }
  0x21   : > { %vm675_vm2 = vcmp.le.s32.totalorder %v674_v4, %v672_v3 }
  0x22   : > { %v676_v6 = vsel %vm675_vm2, 0.0, %v2858_v5 }
  0x23   : > { %678 = vst.msk [vmem:[#allocation2] sm:$0xff] %vm677_vm1, %v676_v6 }
  0x24 PF: > { %vm685_vm3 = vcmask 261120   ;;  %v2774_v12 = vld [vmem:[%s2993_s13 + $0x28] sm:$0xff]   ;;  %v2859_v13 = vmov 0.0   ;;  %v2775_v15 = vld [vmem:[%s2993_s13 + $0x20] sm:$0xff]   ;;  %v2776_v17 = vld [vmem:[%s2993_s13 + $0x18] sm:$0xff]   ;;  %vm2860_vm4 = vmmov 0  }
  0x25   : > { %v2509_v7 = vld [vmem:[%s3380_s14] sm:$0xff]   ;;  %2571 = vmatprep.subr.bf16.mxu0 %v2859_v13  ;;  %2593 = vmatprep.subr.bf16.mxu1 %v2859_v13  ;;  %v791_v14 = vsel %vm685_vm3, %v2774_v12, 0  ;;  %v788_v16 = vsel %vm685_vm3, %v2775_v15, 0  ;;  %v785_v18 = vsel %vm685_vm3, %v2776_v17, 0  ;;  %v2777_v29 = vld [vmem:[%s2993_s13 + $0x10] sm:$0xff]   ;;  %v2778_v31 = vld [vmem:[%s2993_s13 + $0x8] sm:$0xff]  }
  0x26   : > { %v3038_v8 = vunpack.c.l.bf16 %v2509_v7  ;;  %v3040_v9 = vunpack.c.h.bf16 %v2509_v7  ;;  %2572 = vmatpush3.bf16.xpose.msra.mxu0 %v791_v14  ;;  %v782_v30 = vsel %vm685_vm3, %v2777_v29, 0  ;;  %2583 = vmatprep.mubr.msk.bf16.mxu0 %vm2860_vm4, %v2859_v13  ;;  %v779_v32 = vsel %vm685_vm3, %v2778_v31, 0  ;;  %v2779_v33 = vld [vmem:[%s2993_s13] sm:$0xff]   ;;  %s3394_s13 = scalar_lea.vmem %s3367_s1, %s2969_s17  ;;  %s3395_s27 = sld [smem:[#allocation6_spill]] }
  0x27   : > { %2573 = vmatprep.subr.bf16.mxu0 %v2859_v13  ;;  %2595 = vmatprep.mubr.msk.bf16.mxu1 %vm2860_vm4, %v2859_v13  ;;  %v776_v34 = vsel %vm685_vm3, %v2779_v33, 0  ;;  %v2440_v43 = vld [vmem:[%s3394_s13] ss:$0 sm:$0xff]  ;;  %s2861_s19 = smov 96   ;;  %vm843_vm5 = vcmask 64512   ;;  %s2862_s30 = smov 64  }
  0x28   : > { %v686_v10 = vsel %vm685_vm3, %v3038_v8, 0.0  ;;  %v689_v11 = vsel %vm685_vm3, %v3040_v9, 0.0  ;;  %s2863_s15 = smov 88   ;;  %s2864_s24 = smov 120   ;;  %vm971_vm6 = vcmask 1043456  }
  0x29   : > { %687 = vadd.xlane.f32.xlu0 %v686_v10  ;;  %s2865_s12 = smov 56   ;;  %s2866_s20 = smov 80  }
  0x2a   : > { %v3105_v63 = vld [vmem:[#allocation2] sm:$0xff]  ;;  %s2867_s22 = smov 112   ;;  %s2868_s13 = smov 48  }
  0x2b   : > { %s2869_s25 = smov 72   ;;  %s2870_s26 = smov 104  }
  0x2c   : > { %s3396_s18 = scalar_lea.vmem %s3395_s27, %s2969_s17  ;;  %s2871_s27 = smov 40  }
  0x2d   : > { %690 = vadd.xlane.f32.xlu0 %v689_v11  ;;  %v2441_v47 = vld [vmem:[%s3396_s18] ss:$0 sm:$0xff]  ;;  %p2487_p6 = scmp.ge.s32.totalorder %s2848_s29, 1 }
  0x2e   : > { %2574 = vmatpush3.bf16.xpose.msra.mxu0 %v788_v16 }
  0x2f   : > { %2575 = vmatprep.subr.bf16.mxu0 %v2859_v13 }
  0x36   : > { %2576 = vmatpush3.bf16.xpose.msra.mxu0 %v785_v18 }
  0x37   : > { %2577 = vmatprep.subr.bf16.mxu0 %v2859_v13 }
  0x3e   : > { %2578 = vmatpush3.bf16.xpose.msra.mxu0 %v782_v30 }
  0x3f   : > { %2579 = vmatprep.subr.bf16.mxu0 %v2859_v13 }
  0x46   : > { %2580 = vmatpush3.bf16.xpose.msra.mxu0 %v779_v32 }
  0x47   : > { %2581 = vmatprep.subr.bf16.mxu0 %v2859_v13 }
  0x4e   : > { %2582 = vmatpush3.bf16.xpose.msra.mxu0 %v776_v34 }
  0x4f   : > { %2587 = vmatprep.subr.bf16.mxu0 %v2859_v13 }
  0xb2   : > { %v688_v19 = vpop.xlane.xlu0 %687 }
  0xb3   : > { %v693_v20 = vmul.f32 0.03125, %v688_v19 }
  0xb5   : > { %v695_v21 = vsub.f32 %v3038_v8, %v693_v20 }
  0xb6   : > { %v691_v22 = vpop.xlane.xlu0 %690 }
  0xb7   : > { %v694_v23 = vmul.f32 0.03125, %v691_v22  ;;  %v697_v24 = vmul.f32 %v695_v21, %v695_v21 }
  0xb9   : > { %v696_v25 = vsub.f32 %v3040_v9, %v694_v23  ;;  %v699_v26 = vsel %vm685_vm3, %v697_v24, 0.0 }
  0xba   : > { %700 = vadd.xlane.f32.xlu1 %v699_v26 }
  0xbb   : > { %v698_v27 = vmul.f32 %v696_v25, %v696_v25 }
  0xbd   : > { %v702_v28 = vsel %vm685_vm3, %v698_v27, 0.0 }
  0xbe   : > { %703 = vadd.xlane.f32.xlu1 %v702_v28 }
 0x143   : > { %v701_v35 = vpop.xlane.xlu1 %700 }
 0x144   : > { %v705_v36 = vmul.f32 0.03125, %v701_v35 }
 0x146   : > { %v707_v37 = vadd.f32 1e-05, %v705_v36 }
 0x147   : > { %v704_v38 = vpop.xlane.xlu1 %703 }
 0x148   : > { %2790 = vrsqrt.f32 %v707_v37  ;;  %v706_v39 = vmul.f32 0.03125, %v704_v38 }
 0x14a   : > { %v708_v40 = vadd.f32 1e-05, %v706_v39 }
 0x14c   : > { %2792 = vrsqrt.f32 %v708_v40 }
 0x155   : > { %v2791_v41 = vpop.eup %2790 }
 0x156   : > { %v711_v42 = vmul.f32 %v2791_v41, %v695_v21 }
 0x158   : > { %v719_v46 = vmul.f32 %v2440_v43, %v711_v42 }
 0x159   : > { %v2793_v44 = vpop.eup %2792 }
 0x15a   : > { %v712_v45 = vmul.f32 %v2793_v44, %v696_v25  ;;  %v727_v49 = vadd.f32 %v2441_v47, %v719_v46 }
 0x15c   : > { %v720_v48 = vmul.f32 %v2440_v43, %v712_v45 }
 0x15e   : > { %v728_v50 = vadd.f32 %v2441_v47, %v720_v48 }
 0x160   : > { %v729_v51 = vpack.c.bf16 %v728_v50, %v727_v49 }
 0x162   : > { %2584 = vmatmul.mubr.msk.bf16.vlgmr.msra.gmra.mxu0 %vm685_vm3, %v729_v51 }
 0x163   : > { %2589 = vmatprep.mubr.msk.bf16.mxu0 %vm2860_vm4, %v2859_v13 }
 0x222   : > { %v827_v52 = vpop.f32.mrf.mxu0 }
 0x223   : > { %v3087_v53 = vpack.c.bf16 %v827_v52, %v827_v52 }
 0x224   : > { %v2585_v54 = vpop.f32.mrf.mxu0 }
 0x225   : > { %841 = vrot.lane.b32.xlu0 %v3087_v53, %s2861_s19 }
 0x226   : > { %v830_v55 = vpop.f32.mrf.mxu0 }
 0x227   : > { %v3090_v56 = vpack.c.bf16 %v830_v55, %v830_v55 }
 0x228   : > { %v2586_v57 = vpop.f32.mrf.mxu0 }
 0x229   : > { %890 = vrot.lane.b32.xlu1 %v3090_v56, %s2861_s19  ;;  %s3397_s19 = scalar_lea.vmem %s3371_s5, %s2969_s17 }
 0x297   : > { %v842_v58 = vpop.permute.xlu0 %841 }
 0x298   : > { %v848_v59 = vsel %vm843_vm5, %v842_v58, 0 }
 0x299   : > { %2588 = vmatpush3.bf16.xpose.msra.mxu0 %v848_v59 }
 0x29a   : > { %2623 = vmatprep.subr.bf16.mxu0 %v2859_v13 }
 0x29b   : > { %v891_v60 = vpop.permute.xlu1 %890 }
 0x29c   : > { %v896_v61 = vsel %vm843_vm5, %v891_v60, 0 }
 0x29d   : > { %2594 = vmatpush3.bf16.xpose.msra.mxu1 %v896_v61 }
 0x29e   : > { %2599 = vmatprep.subr.bf16.mxu1 %v2859_v13 }
 0x2a0   : > { %2590 = vmatmul.mubr.msk.bf16.vlgmr.msra.gmra.mxu0 %vm843_vm5, %v3087_v53 }
 0x2a1   : > { %2625 = vmatprep.mubr.msk.bf16.mxu0 %vm2860_vm4, %v2859_v13 }
 0x2a4   : > { %2596 = vmatmul.mubr.msk.bf16.vlgmr.msra.gmra.mxu1 %vm843_vm5, %v3090_v56 }
 0x2a5   : > { %2601 = vmatprep.mubr.msk.bf16.mxu1 %vm2860_vm4, %v2859_v13 }
 0x360   : > { %v884_v62 = vpop.f32.mrf.mxu0 }
 0x361   : > { %v938_v0 = vmul.f32 0.35355338, %v884_v62 }
 0x362   : > { %v2591_v1 = vpop.f32.mrf.mxu0 }
 0x363   : > { %v940_v2 = vadd.f32 %v938_v0, %v3105_v63 }
 0x364   : > { %v887_v3 = vpop.f32.mrf.mxu0  ;;  %v932_v4 = vpop.f32.mrf.mxu1 }
 0x365   : > { %v939_v5 = vmul.f32 0.35355338, %v932_v4  ;;  %v942_v6 = vsel %vm843_vm5, %v940_v2, -inf }
 0x366   : > { %v2597_v7 = vpop.f32.mrf.mxu1  ;;  %943 = vmax.xlane.f32.xlu1 %v942_v6  ;;  %v2592_v10 = vpop.f32.mrf.mxu0 }
 0x367   : > { %v941_v11 = vadd.f32 %v939_v5, %v3105_v63 }
 0x368   : > { %v935_v12 = vpop.f32.mrf.mxu1 }
 0x369   : > { %v945_v14 = vsel %vm843_vm5, %v941_v11, -inf }
 0x36a   : > { %946 = vmax.xlane.f32.xlu0 %v945_v14  ;;  %v2598_v15 = vpop.f32.mrf.mxu1 }
 0x377   : > { %1015 = vrot.lane.b32.xlu1 %v3090_v56, %s2862_s30 }
 0x3ef   : > { %v944_v16 = vpop.xlane.xlu1 %943 }
 0x3f0   : > { %v948_v17 = vsub.f32 %v940_v2, %v944_v16 }
 0x3f2   : > { %v950_v18 = vmul.f32 1.442695, %v948_v17 }
 0x3f3   : > { %v947_v19 = vpop.xlane.xlu0 %946  ;;  %v1016_v26 = vpop.permute.xlu1 %1015 }
 0x3f4   : > { %2794 = vpow2.f32 %v950_v18  ;;  %v949_v20 = vsub.f32 %v941_v11, %v947_v19  ;;  %v1021_v35 = vsel %vm971_vm6, %v1016_v26, 0 }
 0x3f6   : > { %v952_v21 = vmul.f32 1.442695, %v949_v20 }
 0x3f8   : > { %2796 = vpow2.f32 %v952_v21 }
 0x401   : > { %v2795_v22 = vpop.eup %2794 }
 0x402   : > { %v954_v23 = vsel %vm843_vm5, %v2795_v22, 0.0 }
 0x403   : > { %955 = vadd.xlane.f32.xlu0 %v954_v23 }
 0x405   : > { %v2797_v24 = vpop.eup %2796 }
 0x406   : > { %v957_v25 = vsel %vm843_vm5, %v2797_v24, 0.0 }
 0x407   : > { %958 = vadd.xlane.f32.xlu1 %v957_v25 }
 0x418   : > { %1067 = vrot.lane.b32.xlu1 %v3087_v53, %s2863_s15 }
 0x419   : > { %966 = vrot.lane.b32.xlu0 %v3087_v53, %s2862_s30 }
 0x41c   : > { %1065 = vrot.lane.b32.xlu1 %v3087_v53, %s2864_s24 }
 0x41d   : > { %1117 = vrot.lane.b32.xlu0 %v3090_v56, %s2863_s15 }
 0x420   : > { %1115 = vrot.lane.b32.xlu1 %v3090_v56, %s2864_s24 }
 0x48c   : > { %v956_v27 = vpop.xlane.xlu0 %955 }
 0x48d   : > { %2798 = vrcp.f32 %v956_v27 }
 0x490   : > { %v967_v28 = vpop.permute.xlu0 %966  ;;  %v959_v29 = vpop.xlane.xlu1 %958 }
 0x491   : > { %v973_v30 = vsel %vm971_vm6, %v967_v28, 0  ;;  %2800 = vrcp.f32 %v959_v29  ;;  %v1064_v29 = vld [vmem:[%s2984_s28] sm:$0xf] }
 0x492   : > { %2600 = vmatpush3.bf16.msra.mxu1 %v973_v30 }
 0x493   : > { %2605 = vmatprep.subr.bf16.mxu1 %v2859_v13 }
 0x494   : > { %v1068_v37 = vpop.permute.xlu1 %1067  ;;  %v1118_v40 = vpop.permute.xlu0 %1117 }
 0x495   : > { %v1073_v39 = vsel %vm843_vm5, %v1068_v37, 0  ;;  %v1123_v42 = vsel %vm843_vm5, %v1118_v40, 0  ;;  %v1290_v37 = vld [vmem:[%s2984_s28 + $0x4] sm:$0xf] }
 0x498   : > { %v1066_v41 = vpop.permute.xlu1 %1065 }
 0x49a   : > { %v2799_v31 = vpop.eup %2798 }
 0x49b   : > { %v962_v32 = vmul.f32 %v2799_v31, %v2795_v22 }
 0x49c   : > { %v1116_v43 = vpop.permute.xlu1 %1115 }
 0x49d   : > { %v964_v33 = vpack.c.bf16 %v962_v32, %v962_v32  ;;  %v1342_v32 = vsel %vm971_vm6, %v1064_v29, 0 }
 0x49e   : > { %v2801_v34 = vpop.eup %2800 }
 0x49f   : > { %2602 = vmatmul.mubr.msk.bf16.vlgmr.msra.gmra.mxu1 %vm843_vm5, %v964_v33  ;;  %v963_v36 = vmul.f32 %v2801_v34, %v2797_v24 }
 0x4a0   : > { %2606 = vmatpush3.bf16.msra.mxu1 %v1021_v35  ;;  %2607 = vmatprep.mubr.msk.bf16.mxu1 %vm2860_vm4, %v2859_v13 }
 0x4a1   : > { %2611 = vmatprep.subr.bf16.mxu1 %v2859_v13  ;;  %v965_v38 = vpack.c.bf16 %v963_v36, %v963_v36 }
 0x4a7   : > { %2608 = vmatmul.mubr.msk.bf16.vlgmr.msra.gmra.mxu1 %vm843_vm5, %v965_v38  ;;  %v1295_v38 = vsel %vm971_vm6, %v1290_v37, 0 }
 0x4a8   : > { %2612 = vmatpush3.bf16.xpose.msra.mxu1 %v1073_v39  ;;  %2613 = vmatprep.mubr.msk.bf16.mxu1 %vm2860_vm4, %v2859_v13 }
 0x4a9   : > { %2617 = vmatprep.subr.bf16.mxu1 %v2859_v13 }
 0x4af   : > { %2614 = vmatmul.mubr.msk.bf16.vlgmr.msra.gmra.mxu1 %vm843_vm5, %v1066_v41 }
 0x4b0   : > { %2618 = vmatpush3.bf16.xpose.msra.mxu1 %v1123_v42  ;;  %2619 = vmatprep.mubr.msk.bf16.mxu1 %vm2860_vm4, %v2859_v13 }
 0x4b1   : > { %2629 = vmatprep.subr.bf16.mxu1 %v2859_v13 }
 0x4b7   : > { %2620 = vmatmul.mubr.msk.bf16.vlgmr.msra.gmra.mxu1 %vm843_vm5, %v1116_v43 }
 0x4b8   : > { %2631 = vmatprep.mubr.msk.bf16.mxu1 %vm2860_vm4, %v2859_v13 }
 0x55f   : > { %v3139_v44 = vpop.f32.mrf.mxu1 }
 0x561   : > { %v2603_v45 = vpop.f32.mrf.mxu1 }
 0x563   : > { %v1012_v46 = vpop.f32.mrf.mxu1 }
 0x565   : > { %v2604_v47 = vpop.f32.mrf.mxu1 }
 0x567   : > { %v3141_v48 = vpop.f32.mrf.mxu1 }
 0x568   : > { %v1063_v49 = vpack.c.bf16 %v3141_v48, %v3139_v44 }
 0x569   : > { %v2609_v50 = vpop.f32.mrf.mxu1 }
 0x56b   : > { %v1060_v51 = vpop.f32.mrf.mxu1 }
 0x56d   : > { %v2610_v52 = vpop.f32.mrf.mxu1 }
 0x56f   : > { %v1109_v54 = vpop.f32.mrf.mxu1 }
 0x570   : > { %v1165_v55 = vmul.f32 0.35355338, %v1109_v54 }
 0x571   : > { %v2615_v57 = vpop.f32.mrf.mxu1 }
 0x572   : > { %v1167_v58 = vadd.f32 %v1165_v55, %v3105_v63 }
 0x573   : > { %v1112_v59 = vpop.f32.mrf.mxu1 }
 0x574   : > { %v1169_v60 = vsel %vm843_vm5, %v1167_v58, -inf }
 0x575   : > { %1170 = vmax.xlane.f32.xlu0 %v1169_v60  ;;  %v2616_v61 = vpop.f32.mrf.mxu1 }
 0x577   : > { %v1159_v62 = vpop.f32.mrf.mxu1 }
 0x578   : > { %v1166_v0 = vmul.f32 0.35355338, %v1159_v62 }
 0x579   : > { %v2621_v1 = vpop.f32.mrf.mxu1 }
 0x57a   : > { %v1168_v2 = vadd.f32 %v1166_v0, %v3105_v63 }
 0x57b   : > { %v1162_v3 = vpop.f32.mrf.mxu1 }
 0x57c   : > { %v1172_v4 = vsel %vm843_vm5, %v1168_v2, -inf }
 0x57d   : > { %1173 = vmax.xlane.f32.xlu1 %v1172_v4  ;;  %v2622_v5 = vpop.f32.mrf.mxu1 }
 0x58e   : > { %1241 = vrot.lane.b32.xlu1 %v3090_v56, %s2865_s12 }
 0x592   : > { %1387 = vrot.lane.b32.xlu1 %v3087_v53, %s2866_s20 }
 0x596   : > { %1437 = vrot.lane.b32.xlu1 %v3090_v56, %s2866_s20 }
 0x59a   : > { %1435 = vrot.lane.b32.xlu1 %v3090_v56, %s2867_s22 }
 0x5fe   : > { %v1171_v6 = vpop.xlane.xlu0 %1170 }
 0x5ff   : > { %v1175_v7 = vsub.f32 %v1167_v58, %v1171_v6 }
 0x601   : > { %v1177_v10 = vmul.f32 1.442695, %v1175_v7 }
 0x603   : > { %2802 = vpow2.f32 %v1177_v10 }
 0x606   : > { %v1174_v11 = vpop.xlane.xlu1 %1173 }
 0x607   : > { %v1176_v12 = vsub.f32 %v1168_v2, %v1174_v11 }
 0x609   : > { %v1179_v14 = vmul.f32 1.442695, %v1176_v12 }
 0x60a   : > { %v1242_v15 = vpop.permute.xlu1 %1241 }
 0x60b   : > { %2804 = vpow2.f32 %v1179_v14  ;;  %v1247_v16 = vsel %vm971_vm6, %v1242_v15, 0 }
 0x60c   : > { %2630 = vmatpush3.bf16.msra.mxu1 %v1247_v16 }
 0x60d   : > { %2641 = vmatprep.subr.bf16.mxu1 %v2859_v13 }
 0x60e   : > { %v1388_v33 = vpop.permute.xlu1 %1387 }
 0x60f   : > { %v1393_v46 = vsel %vm843_vm5, %v1388_v33, 0 }
 0x610   : > { %v2803_v17 = vpop.eup %2802 }
 0x611   : > { %v1181_v18 = vsel %vm843_vm5, %v2803_v17, 0.0 }
 0x612   : > { %1182 = vadd.xlane.f32.xlu0 %v1181_v18  ;;  %v1438_v34 = vpop.permute.xlu1 %1437 }
 0x613   : > { %v1443_v35 = vsel %vm843_vm5, %v1438_v34, 0 }
 0x616   : > { %v1436_v36 = vpop.permute.xlu1 %1435 }
 0x618   : > { %v2805_v19 = vpop.eup %2804 }
 0x619   : > { %v1184_v20 = vsel %vm843_vm5, %v2805_v19, 0.0 }
 0x61a   : > { %1185 = vadd.xlane.f32.xlu0 %v1184_v20 }
 0x630   : > { %1193 = vrot.lane.b32.xlu0 %v3087_v53, %s2865_s12 }
 0x634   : > { %1385 = vrot.lane.b32.xlu0 %v3087_v53, %s2867_s22 }
 0x69b   : > { %v1183_v21 = vpop.xlane.xlu0 %1182 }
 0x69c   : > { %2806 = vrcp.f32 %v1183_v21 }
 0x6a3   : > { %v1186_v22 = vpop.xlane.xlu0 %1185 }
 0x6a4   : > { %2808 = vrcp.f32 %v1186_v22 }
 0x6a7   : > { %v1194_v23 = vpop.permute.xlu0 %1193 }
 0x6a8   : > { %v1199_v24 = vsel %vm971_vm6, %v1194_v23, 0 }
 0x6a9   : > { %v2807_v25 = vpop.eup %2806  ;;  %2624 = vmatpush3.bf16.msra.mxu0 %v1199_v24 }
 0x6aa   : > { %v1189_v26 = vmul.f32 %v2807_v25, %v2803_v17  ;;  %2635 = vmatprep.subr.bf16.mxu0 %v2859_v13 }
 0x6ab   : > { %v1386_v50 = vpop.permute.xlu0 %1385 }
 0x6ac   : > { %v1191_v27 = vpack.c.bf16 %v1189_v26, %v1189_v26 }
 0x6ae   : > { %2626 = vmatmul.mubr.msk.bf16.vlgmr.msra.gmra.mxu0 %vm843_vm5, %v1191_v27 }
 0x6af   : > { %2637 = vmatprep.mubr.msk.bf16.mxu0 %vm2860_vm4, %v2859_v13  ;;  %2636 = vmatpush3.bf16.msra.mxu0 %v1295_v38 }
 0x6b0   : > { %2647 = vmatprep.subr.bf16.mxu0 %v2859_v13 }
 0x6b1   : > { %v2809_v28 = vpop.eup %2808 }
 0x6b2   : > { %v1190_v30 = vmul.f32 %v2809_v28, %v2805_v19 }
 0x6b4   : > { %v1192_v31 = vpack.c.bf16 %v1190_v30, %v1190_v30 }
 0x6b6   : > { %2632 = vmatmul.mubr.msk.bf16.vlgmr.msra.gmra.mxu1 %vm843_vm5, %v1192_v31 }
 0x6b7   : > { %2642 = vmatpush3.bf16.msra.mxu1 %v1342_v32  ;;  %2643 = vmatprep.mubr.msk.bf16.mxu1 %vm2860_vm4, %v2859_v13 }
 0x6b8   : > { %2653 = vmatprep.subr.bf16.mxu1 %v2859_v13 }
 0x6be   : > { %2644 = vmatmul.mubr.msk.bf16.vlgmr.msra.gmra.mxu1 %vm843_vm5, %v1063_v49 }
 0x6bf   : > { %2654 = vmatpush3.bf16.xpose.msra.mxu1 %v1443_v35  ;;  %2655 = vmatprep.mubr.msk.bf16.mxu1 %vm2860_vm4, %v2859_v13 }
 0x6c0   : > { %2665 = vmatprep.subr.bf16.mxu1 %v2859_v13 }
 0x6c6   : > { %2656 = vmatmul.mubr.msk.bf16.vlgmr.msra.gmra.mxu1 %vm843_vm5, %v1436_v36 }
 0x6c7   : > { %2667 = vmatprep.mubr.msk.bf16.mxu1 %vm2860_vm4, %v2859_v13 }
 0x76e   : > { %v1235_v39 = vpop.f32.mrf.mxu0 }
 0x770   : > { %v2627_v40 = vpop.f32.mrf.mxu0 }
 0x772   : > { %v1238_v41 = vpop.f32.mrf.mxu0 }
 0x774   : > { %v2628_v42 = vpop.f32.mrf.mxu0 }
 0x776   : > { %v1283_v43 = vpop.f32.mrf.mxu1 }
 0x777   : > { %v1289_v44 = vpack.c.bf16 %v1283_v43, %v1235_v39  ;;  %v1610_v43 = vld [vmem:[%s2984_s28 + $0x8] sm:$0xf] }
 0x778   : > { %v2633_v45 = vpop.f32.mrf.mxu1 }
 0x779   : > { %2638 = vmatmul.mubr.msk.bf16.vlgmr.msra.gmra.mxu0 %vm843_vm5, %v1289_v44  ;;  %v1615_v44 = vsel %vm971_vm6, %v1610_v43, 0 }
 0x77a   : > { %2648 = vmatpush3.bf16.xpose.msra.mxu0 %v1393_v46  ;;  %v1286_v47 = vpop.f32.mrf.mxu1  ;;  %2649 = vmatprep.mubr.msk.bf16.mxu0 %vm2860_vm4, %v2859_v13 }
 0x77b   : > { %2659 = vmatprep.subr.bf16.mxu0 %v2859_v13 }
 0x77c   : > { %v2634_v48 = vpop.f32.mrf.mxu1 }
 0x77e   : > { %v3189_v49 = vpop.f32.mrf.mxu1 }
 0x780   : > { %v2645_v51 = vpop.f32.mrf.mxu1 }
 0x781   : > { %2650 = vmatmul.mubr.msk.bf16.vlgmr.msra.gmra.mxu0 %vm843_vm5, %v1386_v50 }
 0x782   : > { %v3192_v52 = vpop.f32.mrf.mxu1  ;;  %2661 = vmatprep.mubr.msk.bf16.mxu0 %vm2860_vm4, %v2859_v13 }
 0x784   : > { %v2646_v54 = vpop.f32.mrf.mxu1 }
 0x786   : > { %v1479_v55 = vpop.f32.mrf.mxu1 }
 0x787   : > { %v1486_v57 = vmul.f32 0.35355338, %v1479_v55 }
 0x788   : > { %v2657_v58 = vpop.f32.mrf.mxu1 }
 0x789   : > { %v1488_v59 = vadd.f32 %v1486_v57, %v3105_v63 }
 0x78a   : > { %v1482_v60 = vpop.f32.mrf.mxu1 }
 0x78b   : > { %v1492_v61 = vsel %vm843_vm5, %v1488_v59, -inf }
 0x78c   : > { %1493 = vmax.xlane.f32.xlu1 %v1492_v61  ;;  %v2658_v62 = vpop.f32.mrf.mxu1 }
 0x79d   : > { %1561 = vrot.lane.b32.xlu1 %v3090_v56, %s2868_s13 }
 0x7a1   : > { %1662 = vrot.lane.b32.xlu1 %v3087_v53, %s2869_s25 }
 0x7a5   : > { %1712 = vrot.lane.b32.xlu1 %v3090_v56, %s2869_s25 }
 0x7a9   : > { %1710 = vrot.lane.b32.xlu1 %v3090_v56, %s2870_s26 }
 0x815   : > { %v1494_v0 = vpop.xlane.xlu1 %1493 }
 0x816   : > { %v1496_v3 = vsub.f32 %v1488_v59, %v1494_v0 }
 0x818   : > { %v1499_v4 = vmul.f32 1.442695, %v1496_v3 }
 0x819   : > { %v1562_v1 = vpop.permute.xlu1 %1561 }
 0x81a   : > { %v1567_v2 = vsel %vm971_vm6, %v1562_v1, 0  ;;  %2810 = vpow2.f32 %v1499_v4 }
 0x81b   : > { %2666 = vmatpush3.bf16.msra.mxu1 %v1567_v2 }
 0x81c   : > { %2677 = vmatprep.subr.bf16.mxu1 %v2859_v13 }
 0x81d   : > { %v1663_v29 = vpop.permute.xlu1 %1662 }
 0x81e   : > { %v1668_v31 = vsel %vm843_vm5, %v1663_v29, 0 }
 0x821   : > { %v1713_v55 = vpop.permute.xlu1 %1712 }
 0x822   : > { %v1718_v60 = vsel %vm843_vm5, %v1713_v55, 0 }
 0x825   : > { %v1711_v0 = vpop.permute.xlu1 %1710 }
 0x827   : > { %v2811_v18 = vpop.eup %2810 }
 0x828   : > { %v1504_v20 = vsel %vm843_vm5, %v2811_v18, 0.0 }
 0x839   : > { %v3206_v5 = vpop.f32.mrf.mxu0 }
 0x83b   : > { %v2639_v6 = vpop.f32.mrf.mxu0 }
 0x83d   : > { %v3208_v7 = vpop.f32.mrf.mxu0 }
 0x83f   : > { %v2640_v10 = vpop.f32.mrf.mxu0 }
 0x840   : > { %v1379_v10 = vadd.f32 %v3189_v49, %v3206_v5 }
 0x841   : > { %v1429_v11 = vpop.f32.mrf.mxu0 }
 0x842   : > { %v1485_v12 = vmul.f32 0.35355338, %v1429_v11 }
 0x843   : > { %v2651_v14 = vpop.f32.mrf.mxu0 }
 0x844   : > { %v1487_v15 = vadd.f32 %v1485_v12, %v3105_v63 }
 0x845   : > { %v1432_v16 = vpop.f32.mrf.mxu0 }
 0x846   : > { %v1489_v17 = vsel %vm843_vm5, %v1487_v15, -inf }
 0x847   : > { %1490 = vmax.xlane.f32.xlu0 %v1489_v17  ;;  %v2652_v19 = vpop.f32.mrf.mxu0 }
 0x84b   : > { %1505 = vadd.xlane.f32.xlu0 %v1504_v20 }
 0x8d0   : > { %v1491_v21 = vpop.xlane.xlu0 %1490 }
 0x8d1   : > { %v1495_v22 = vsub.f32 %v1487_v15, %v1491_v21  ;;  %v1382_v15 = vadd.f32 %v3192_v52, %v3208_v7 }
 0x8d3   : > { %v1497_v23 = vmul.f32 1.442695, %v1495_v22 }
 0x8d4   : > { %v1506_v24 = vpop.xlane.xlu0 %1505 }
 0x8d5   : > { %2812 = vpow2.f32 %v1497_v23 }
 0x8d6   : > { %2814 = vrcp.f32 %v1506_v24 }
 0x8e2   : > { %v2813_v25 = vpop.eup %2812 }
 0x8e3   : > { %v2815_v26 = vpop.eup %2814  ;;  %v1501_v27 = vsel %vm843_vm5, %v2813_v25, 0.0 }
 0x8e4   : > { %1502 = vadd.xlane.f32.xlu0 %v1501_v27  ;;  %v1510_v28 = vmul.f32 %v2815_v26, %v2811_v18 }
 0x8e6   : > { %v1512_v30 = vpack.c.bf16 %v1510_v28, %v1510_v28 }
 0x8e8   : > { %2668 = vmatmul.mubr.msk.bf16.vlgmr.msra.gmra.mxu1 %vm843_vm5, %v1512_v30 }
 0x8e9   : > { %2678 = vmatpush3.bf16.xpose.msra.mxu1 %v1668_v31  ;;  %2679 = vmatprep.mubr.msk.bf16.mxu1 %vm2860_vm4, %v2859_v13 }
 0x8ea   : > { %2689 = vmatprep.subr.bf16.mxu1 %v2859_v13 }
 0x8fa   : > { %1513 = vrot.lane.b32.xlu0 %v3087_v53, %s2868_s13 }
 0x8fe   : > { %1660 = vrot.lane.b32.xlu0 %v3087_v53, %s2870_s26 }
 0x96d   : > { %v1503_v32 = vpop.xlane.xlu0 %1502 }
 0x96e   : > { %2816 = vrcp.f32 %v1503_v32 }
 0x971   : > { %v1514_v33 = vpop.permute.xlu0 %1513 }
 0x972   : > { %v1519_v34 = vsel %vm971_vm6, %v1514_v33, 0 }
 0x973   : > { %2660 = vmatpush3.bf16.msra.mxu0 %v1519_v34 }
 0x974   : > { %2671 = vmatprep.subr.bf16.mxu0 %v2859_v13 }
 0x975   : > { %v1661_v35 = vpop.permute.xlu0 %1660 }
 0x976   : > { %2680 = vmatmul.mubr.msk.bf16.vlgmr.msra.gmra.mxu1 %vm843_vm5, %v1661_v35 }
 0x977   : > { %2691 = vmatprep.mubr.msk.bf16.mxu1 %vm2860_vm4, %v2859_v13 }
 0x97b   : > { %v2817_v36 = vpop.eup %2816 }
 0x97c   : > { %v1509_v37 = vmul.f32 %v2817_v36, %v2813_v25  ;;  %v1885_v36 = vld [vmem:[%s2984_s28 + $0xc] sm:$0xf] }
 0x97e   : > { %v1511_v38 = vpack.c.bf16 %v1509_v37, %v1509_v37  ;;  %v1890_v37 = vsel %vm971_vm6, %v1885_v36, 0 }
 0x980   : > { %2662 = vmatmul.mubr.msk.bf16.vlgmr.msra.gmra.mxu0 %vm843_vm5, %v1511_v38 }
 0x981   : > { %2673 = vmatprep.mubr.msk.bf16.mxu0 %vm2860_vm4, %v2859_v13  ;;  %2672 = vmatpush3.bf16.msra.mxu0 %v1615_v44 }
 0x982   : > { %2683 = vmatprep.subr.bf16.mxu0 %v2859_v13 }
 0x9a8   : > { %v1603_v39 = vpop.f32.mrf.mxu1 }
 0x9aa   : > { %v2669_v40 = vpop.f32.mrf.mxu1 }
 0x9ac   : > { %v1606_v41 = vpop.f32.mrf.mxu1 }
 0x9ae   : > { %v2670_v42 = vpop.f32.mrf.mxu1 }
 0xa36   : > { %v1704_v45 = vpop.f32.mrf.mxu1 }
 0xa37   : > { %v1760_v46 = vmul.f32 0.35355338, %v1704_v45 }
 0xa38   : > { %v2681_v47 = vpop.f32.mrf.mxu1 }
 0xa39   : > { %v1762_v48 = vadd.f32 %v1760_v46, %v3105_v63 }
 0xa3a   : > { %v1707_v50 = vpop.f32.mrf.mxu1 }
 0xa3b   : > { %v1764_v51 = vsel %vm843_vm5, %v1762_v48, -inf  ;;  %v2471_v50 = vld [vmem:[%s3397_s19] ss:$0 sm:$0xff] }
 0xa3c   : > { %1765 = vmax.xlane.f32.xlu0 %v1764_v51  ;;  %v2682_v54 = vpop.f32.mrf.mxu1 }
 0xa40   : > { %v1555_v57 = vpop.f32.mrf.mxu0 }
 0xa41   : > { %v1609_v58 = vpack.c.bf16 %v1603_v39, %v1555_v57 }
 0xa42   : > { %v2663_v59 = vpop.f32.mrf.mxu0 }
 0xa43   : > { %2674 = vmatmul.mubr.msk.bf16.vlgmr.msra.gmra.mxu0 %vm843_vm5, %v1609_v58 }
 0xa44   : > { %2684 = vmatpush3.bf16.xpose.msra.mxu0 %v1718_v60  ;;  %v1558_v61 = vpop.f32.mrf.mxu0  ;;  %2685 = vmatprep.mubr.msk.bf16.mxu0 %vm2860_vm4, %v2859_v13 }
 0xa45   : > { %2695 = vmatprep.subr.bf16.mxu0 %v2859_v13 }
 0xa46   : > { %v2664_v62 = vpop.f32.mrf.mxu0 }
 0xa4b   : > { %2686 = vmatmul.mubr.msk.bf16.vlgmr.msra.gmra.mxu0 %vm843_vm5, %v1711_v0 }
 0xa4c   : > { %2697 = vmatprep.mubr.msk.bf16.mxu0 %vm2860_vm4, %v2859_v13 }
 0xac5   : > { %v1766_v1 = vpop.xlane.xlu0 %1765 }
 0xac6   : > { %v1770_v2 = vsub.f32 %v1762_v48, %v1766_v1 }
 0xac8   : > { %v1772_v3 = vmul.f32 1.442695, %v1770_v2 }
 0xaca   : > { %2818 = vpow2.f32 %v1772_v3 }
 0xad7   : > { %v2819_v4 = vpop.eup %2818 }
 0xad8   : > { %v1776_v6 = vsel %vm843_vm5, %v2819_v4, 0.0 }
 0xad9   : > { %1777 = vadd.xlane.f32.xlu0 %v1776_v6 }
 0xb03   : > { %v1651_v11 = vpop.f32.mrf.mxu0 }
 0xb04   : > { %v1658_v12 = vadd.f32 %v1651_v11, %v1379_v10 }
 0xb05   : > { %v2675_v14 = vpop.f32.mrf.mxu0 }
 0xb06   : > { %v2780_v14 = vld [vmem:[%s3006_s4 + $0x8] sm:$0xff]  }
 0xb07   : > { %v1654_v16 = vpop.f32.mrf.mxu0 }
 0xb08   : > { %v3249_v17 = vadd.f32 %v1654_v16, %v1382_v15  ;;  %v2781_v15 = vld [vmem:[%s3006_s4] sm:$0xff]   ;;  %v2782_v16 = vld [vmem:[%s3016_s3 + $0x38] sm:$0xff]  }
 0xb09   : > { %v2676_v18 = vpop.f32.mrf.mxu0 }
 0xb0a   : > { %v2784_v18 = vld [vmem:[%s3016_s3 + $0x28] sm:$0xff]  }
 0xb0b   : > { %v1754_v19 = vpop.f32.mrf.mxu0 }
 0xb0c   : > { %v1761_v20 = vmul.f32 0.35355338, %v1754_v19  ;;  %v2785_v19 = vld [vmem:[%s3016_s3 + $0x20] sm:$0xff]  }
 0xb0d   : > { %v2687_v21 = vpop.f32.mrf.mxu0 }
 0xb0e   : > { %v1763_v22 = vadd.f32 %v1761_v20, %v3105_v63  ;;  %v2786_v20 = vld [vmem:[%s3016_s3 + $0x18] sm:$0xff]  }
 0xb0f   : > { %v1757_v23 = vpop.f32.mrf.mxu0 }
 0xb10   : > { %v1767_v24 = vsel %vm843_vm5, %v1763_v22, -inf }
 0xb11   : > { %1768 = vmax.xlane.f32.xlu1 %v1767_v24  ;;  %v2688_v49 = vpop.f32.mrf.mxu0 }
 0xb22   : > { %1836 = vrot.lane.b32.xlu1 %v3090_v56, %s2871_s27 }
 0xb62   : > { %v1778_v28 = vpop.xlane.xlu0 %1777 }
 0xb9a   : > { %v1769_v5 = vpop.xlane.xlu1 %1768 }
 0xb9b   : > { %v1771_v25 = vsub.f32 %v1763_v22, %v1769_v5 }
 0xb9d   : > { %v1774_v52 = vmul.f32 1.442695, %v1771_v25 }
 0xb9e   : > { %v1837_v7 = vpop.permute.xlu1 %1836 }
 0xb9f   : > { %2820 = vpow2.f32 %v1774_v52  ;;  %v1842_v26 = vsel %vm971_vm6, %v1837_v7, 0  ;;  %v2472_v7 = vld [vmem:[%s635_s21] ss:$0 sm:$0xff] }
 0xba0   : > { %2696 = vmatpush3.bf16.msra.mxu0 %v1842_v26  ;;  %2822 = vrcp.f32 %v1778_v28  ;;  %v2473_v28 = vld [vmem:[%s638_s2] ss:$0 sm:$0xff] }
 0xba1   : > { %2707 = vmatprep.subr.bf16.mxu0 %v2859_v13 }
 0xbac   : > { %v2821_v27 = vpop.eup %2820 }
 0xbad   : > { %v1779_v63 = vsel %vm843_vm5, %v2821_v27, 0.0  ;;  %v2823_v29 = vpop.eup %2822 }
 0xbae   : > { %1780 = vadd.xlane.f32.xlu0 %v1779_v63  ;;  %v1784_v30 = vmul.f32 %v2823_v29, %v2819_v4 }
 0xbb0   : > { %v1786_v33 = vpack.c.bf16 %v1784_v30, %v1784_v30 }
 0xbc4   : > { %1788 = vrot.lane.b32.xlu0 %v3087_v53, %s2871_s27 }
 0xc37   : > { %v1781_v56 = vpop.xlane.xlu0 %1780 }
 0xc38   : > { %2824 = vrcp.f32 %v1781_v56 }
 0xc3b   : > { %v1789_v31 = vpop.permute.xlu0 %1788 }
 0xc3c   : > { %v1794_v32 = vsel %vm971_vm6, %v1789_v31, 0 }
 0xc3d   : > { %2690 = vmatpush3.bf16.msra.mxu1 %v1794_v32  ;;  %v2787_v32 = vld [vmem:[%s3016_s3 + $0x10] sm:$0xff]  }
 0xc3e   : > { %2701 = vmatprep.subr.bf16.mxu1 %v2859_v13 }
 0xc40   : > { %2692 = vmatmul.mubr.msk.bf16.vlgmr.msra.gmra.mxu1 %vm843_vm5, %v1786_v33  ;;  %v2788_v33 = vld [vmem:[%s3016_s3 + $0x8] sm:$0xff]  }
 0xc41   : > { %2703 = vmatprep.mubr.msk.bf16.mxu1 %vm2860_vm4, %v2859_v13  ;;  %2702 = vmatpush3.bf16.msra.mxu1 %v1890_v37 }
 0xc42   : > { %2715 = vmatprep.subr.bf16.mxu1 %v2859_v13 }
 0xc45   : > { %v2825_v53 = vpop.eup %2824 }
 0xc46   : > { %v1785_v34 = vmul.f32 %v2825_v53, %v2821_v27  ;;  %v2789_v53 = vld [vmem:[%s3016_s3] sm:$0xff]  }
 0xc48   : > { %v1787_v35 = vpack.c.bf16 %v1785_v34, %v1785_v34  ;;  %v2474_v34 = vld [vmem:[%s646_s16] ss:$0 sm:$0xff] }
 0xc4a   : > { %2698 = vmatmul.mubr.msk.bf16.vlgmr.msra.gmra.mxu0 %vm843_vm5, %v1787_v35 }
 0xc4b   : > { %2711 = vmatprep.mubr.msk.bf16.mxu0 %vm2860_vm4, %v2859_v13  ;;  %2708 = vmatpush3.bf16.msra.mxu0 %v2780_v14 }
 0xc4c   : > { %2709 = vmatprep.subr.bf16.mxu0 %v2859_v13 }
 0xc4f   : > { %2710 = vmatpush3.bf16.msra.mxu0 %v2781_v15 }
 0xd00   : > { %v1830_v38 = vpop.f32.mrf.mxu1 }
 0xd02   : > { %v2693_v39 = vpop.f32.mrf.mxu1 }
 0xd04   : > { %v1833_v40 = vpop.f32.mrf.mxu1 }
 0xd06   : > { %v2694_v41 = vpop.f32.mrf.mxu1 }
 0xd0a   : > { %v1878_v42 = vpop.f32.mrf.mxu0 }
 0xd0b   : > { %v1884_v43 = vpack.c.bf16 %v1878_v42, %v1830_v38 }
 0xd0c   : > { %v2699_v44 = vpop.f32.mrf.mxu0 }
 0xd0d   : > { %2704 = vmatmul.mubr.msk.bf16.vlgmr.msra.gmra.mxu1 %vm843_vm5, %v1884_v43 }
 0xd0e   : > { %v1881_v45 = vpop.f32.mrf.mxu0  ;;  %2731 = vmatprep.mubr.msk.bf16.mxu1 %vm2860_vm4, %v2859_v13  ;;  %2716 = vmatpush3.bf16.msra.mxu1 %v2782_v16 }
 0xd0f   : > { %2717 = vmatprep.subr.bf16.mxu1 %v2859_v13 }
 0xd10   : > { %v2700_v46 = vpop.f32.mrf.mxu0 }
 0xdcd   : > { %v1926_v47 = vpop.f32.mrf.mxu1 }
 0xdce   : > { %v1933_v48 = vadd.f32 %v1926_v47, %v1658_v12 }
 0xdcf   : > { %v2705_v51 = vpop.f32.mrf.mxu1 }
 0xdd0   : > { %v1935_v54 = vadd.f32 %v3038_v8, %v1933_v48 }
 0xdd1   : > { %v1929_v55 = vpop.f32.mrf.mxu1 }
 0xdd2   : > { %v3278_v57 = vadd.f32 %v2471_v50, %v1935_v54  ;;  %v1934_v58 = vadd.f32 %v1929_v55, %v3249_v17  ;;  %v2783_v17 = vld [vmem:[%s3016_s3 + $0x30] sm:$0xff]  }
 0xdd3   : > { %v2706_v59 = vpop.f32.mrf.mxu1  ;;  %2718 = vmatpush3.bf16.msra.mxu1 %v2783_v17 }
 0xdd4   : > { %v1936_v60 = vadd.f32 %v3040_v9, %v1934_v58  ;;  %v1948_v61 = vsel %vm685_vm3, %v3278_v57, 0.0  ;;  %2719 = vmatprep.subr.bf16.mxu1 %v2859_v13 }
 0xdd5   : > { %1949 = vadd.xlane.f32.xlu1 %v1948_v61 }
 0xdd6   : > { %v3284_v62 = vadd.f32 %v2471_v50, %v1936_v60 }
 0xdd7   : > { %2720 = vmatpush3.bf16.msra.mxu1 %v2784_v18 }
 0xdd8   : > { %v1951_v0 = vsel %vm685_vm3, %v3284_v62, 0.0  ;;  %2721 = vmatprep.subr.bf16.mxu1 %v2859_v13 }
 0xdd9   : > { %1952 = vadd.xlane.f32.xlu0 %v1951_v0 }
 0xddb   : > { %2722 = vmatpush3.bf16.msra.mxu1 %v2785_v19 }
 0xddc   : > { %2723 = vmatprep.subr.bf16.mxu1 %v2859_v13 }
 0xddf   : > { %2724 = vmatpush3.bf16.msra.mxu1 %v2786_v20 }
 0xde0   : > { %2725 = vmatprep.subr.bf16.mxu1 %v2859_v13 }
 0xde3   : > { %2726 = vmatpush3.bf16.msra.mxu1 %v2787_v32 }
 0xde4   : > { %2727 = vmatprep.subr.bf16.mxu1 %v2859_v13 }
 0xde7   : > { %2728 = vmatpush3.bf16.msra.mxu1 %v2788_v33 }
 0xde8   : > { %2729 = vmatprep.subr.bf16.mxu1 %v2859_v13  ;;  %v2486_v13 = vld [vmem:[%s654_s23] ss:$0 sm:$0xff] }
 0xdeb   : > { %2730 = vmatpush3.bf16.msra.mxu1 %v2789_v53 }
 0xe5e   : > { %v1950_v8 = vpop.xlane.xlu1 %1949 }
 0xe5f   : > { %v1954_v1 = vmul.f32 0.03125, %v1950_v8 }
 0xe61   : > { %v1956_v2 = vsub.f32 %v3278_v57, %v1954_v1 }
 0xe62   : > { %v1953_v3 = vpop.xlane.xlu0 %1952 }
 0xe63   : > { %v1955_v9 = vmul.f32 0.03125, %v1953_v3  ;;  %v1958_v4 = vmul.f32 %v1956_v2, %v1956_v2 }
 0xe65   : > { %v1957_v6 = vsub.f32 %v3284_v62, %v1955_v9  ;;  %v1960_v10 = vsel %vm685_vm3, %v1958_v4, 0.0 }
 0xe66   : > { %1961 = vadd.xlane.f32.xlu0 %v1960_v10 }
 0xe67   : > { %v1959_v11 = vmul.f32 %v1957_v6, %v1957_v6 }
 0xe69   : > { %v1963_v12 = vsel %vm685_vm3, %v1959_v11, 0.0 }
 0xe6a   : > { %1964 = vadd.xlane.f32.xlu1 %v1963_v12 }
 0xeef   : > { %v1962_v21 = vpop.xlane.xlu0 %1961 }
 0xef0   : > { %v1966_v22 = vmul.f32 0.03125, %v1962_v21 }
 0xef2   : > { %v1968_v23 = vadd.f32 1e-05, %v1966_v22 }
 0xef3   : > { %v1965_v24 = vpop.xlane.xlu1 %1964 }
 0xef4   : > { %2826 = vrsqrt.f32 %v1968_v23  ;;  %v1967_v49 = vmul.f32 0.03125, %v1965_v24 }
 0xef6   : > { %v1969_v5 = vadd.f32 1e-05, %v1967_v49 }
 0xef8   : > { %2828 = vrsqrt.f32 %v1969_v5 }
 0xf01   : > { %v2827_v25 = vpop.eup %2826 }
 0xf02   : > { %v1972_v52 = vmul.f32 %v2827_v25, %v1956_v2 }
 0xf04   : > { %v1980_v63 = vmul.f32 %v2472_v7, %v1972_v52 }
 0xf05   : > { %v2829_v26 = vpop.eup %2828 }
 0xf06   : > { %v1973_v27 = vmul.f32 %v2829_v26, %v1957_v6  ;;  %v1988_v56 = vadd.f32 %v2473_v28, %v1980_v63 }
 0xf08   : > { %v1981_v29 = vmul.f32 %v2472_v7, %v1973_v27 }
 0xf0a   : > { %v1989_v30 = vadd.f32 %v2473_v28, %v1981_v29 }
 0xf0c   : > { %v1990_v31 = vpack.c.bf16 %v1989_v30, %v1988_v56 }
 0xf0e   : > { %2712 = vmatmul.mubr.msk.bf16.vlgmr.msra.gmra.mxu0 %vm685_vm3, %v1990_v31 }
 0xfce   : > { %v2051_v35 = vpop.f32.mrf.mxu0 }
 0xfcf   : > { %v2052_v37 = vadd.f32 %v2474_v34, %v2051_v35 }
 0xfd0   : > { %v2713_v36 = vpop.f32.mrf.mxu0 }
 0xfd1   : > { %v2058_v41 = vmax.f32 %v2052_v37, 0.0 }
 0xfd2   : > { %v2054_v38 = vpop.f32.mrf.mxu0 }
 0xfd3   : > { %v2055_v39 = vadd.f32 %v2474_v34, %v2054_v38 }
 0xfd4   : > { %v2714_v40 = vpop.f32.mrf.mxu0 }
 0xfd5   : > { %v2059_v42 = vmax.f32 %v2055_v39, 0.0 }
 0xfd7   : > { %v2060_v43 = vpack.c.bf16 %v2059_v42, %v2058_v41 }
 0xfd9   : > { %2732 = vmatmul.mubr.bf16.vlgmr.msra.gmra.mxu1 %v2060_v43 }
0x1099   : > { %v2159_v44 = vpop.f32.mrf.mxu1 }
0x109a   : > { %v2166_v45 = vadd.f32 %v2159_v44, %v3278_v57 }
0x109b   : > { %v2733_v46 = vpop.f32.mrf.mxu1 }
0x109c   : > { %v2175_v47 = vadd.f32 %v2486_v13, %v2166_v45  ;;  %2180 = sbr.rel (%p2487_p6) target bundleno = 4261 (0x10a5), region = 84 }
0x109d   : > { %v2162_v48 = vpop.f32.mrf.mxu1 }
0x109e   : > { %v2167_v50 = vadd.f32 %v2162_v48, %v3284_v62 }
0x109f   : > { %v2734_v51 = vpop.f32.mrf.mxu1 }
0x10a0   : > { %v2176_v54 = vadd.f32 %v2486_v13, %v2167_v50 }
0x10a1   : > { %v2504_v55 = vpack.c.bf16 %v2175_v47, %v2175_v47  ;;  %vm2189_vm7 = vcmask 257024  }
0x10a2   : > { %v2505_v58 = vpack.c.bf16 %v2176_v54, %v2176_v54 }
0x10a3   : > { %2190 = vst.msk [vmem:[%s3380_s14] sm:$0xf] %vm2189_vm7, %v2504_v55 }
0x10a4   : > { %2191 = vst.msk [vmem:[%s3380_s14 + $0x4] sm:$0xf] %vm2189_vm7, %v2505_v58 }
0x10a5 PF: > { %p2490_p7 = scmp.ne.s32.totalorder %s2848_s29, 1 }
0x10a6   : > { %s3398_s13 = sld [smem:[#allocation9_spill]] (!%p2490_p7) }
0x10a7   : > { %2195 = sbr.rel (%p2490_p7) target bundleno = 4583 (0x11e7), region = 88  ;;  %s3399_s27 = sld [smem:[#allocation10_spill]] (!%p2490_p7) }
0x10ac   : > { %v2198_v57 = vsel %vm685_vm3, %v2175_v47, 0.0  ;;  %v2201_v59 = vsel %vm685_vm3, %v2176_v54, 0.0  ;;  %v2491_v17 = vld [vmem:[%s3398_s13] ss:$0 sm:$0xff]  ;;  %vm2248_vm8 = vcmask 257024  }
0x10ad   : > { %2199 = vadd.xlane.f32.xlu0 %v2198_v57  ;;  %v2492_v19 = vld [vmem:[%s3399_s27] ss:$0 sm:$0xff] }
0x10b1   : > { %2202 = vadd.xlane.f32.xlu0 %v2201_v59 }
0x1136   : > { %v2200_v60 = vpop.xlane.xlu0 %2199 }
0x1137   : > { %v2204_v61 = vmul.f32 0.03125, %v2200_v60 }
0x1139   : > { %v2206_v62 = vsub.f32 %v2175_v47, %v2204_v61 }
0x113a   : > { %v2203_v0 = vpop.xlane.xlu0 %2202 }
0x113b   : > { %v2205_v8 = vmul.f32 0.03125, %v2203_v0  ;;  %v2208_v1 = vmul.f32 %v2206_v62, %v2206_v62 }
0x113d   : > { %v2207_v2 = vsub.f32 %v2176_v54, %v2205_v8  ;;  %v2210_v3 = vsel %vm685_vm3, %v2208_v1, 0.0 }
0x113e   : > { %2211 = vadd.xlane.f32.xlu1 %v2210_v3 }
0x113f   : > { %v2209_v9 = vmul.f32 %v2207_v2, %v2207_v2 }
0x1141   : > { %v2213_v4 = vsel %vm685_vm3, %v2209_v9, 0.0 }
0x1142   : > { %2214 = vadd.xlane.f32.xlu1 %v2213_v4 }
0x11c7   : > { %v2212_v6 = vpop.xlane.xlu1 %2211 }
0x11c8   : > { %v2216_v10 = vmul.f32 0.03125, %v2212_v6 }
0x11ca   : > { %v2218_v11 = vadd.f32 1e-05, %v2216_v10 }
0x11cb   : > { %v2215_v12 = vpop.xlane.xlu1 %2214 }
0x11cc   : > { %2830 = vrsqrt.f32 %v2218_v11  ;;  %v2217_v14 = vmul.f32 0.03125, %v2215_v12 }
0x11ce   : > { %v2219_v15 = vadd.f32 1e-05, %v2217_v14 }
0x11d0   : > { %2832 = vrsqrt.f32 %v2219_v15 }
0x11d9   : > { %v2831_v16 = vpop.eup %2830 }
0x11da   : > { %v2222_v18 = vmul.f32 %v2831_v16, %v2206_v62 }
0x11dc   : > { %v2230_v20 = vmul.f32 %v2491_v17, %v2222_v18 }
0x11dd   : > { %v2833_v21 = vpop.eup %2832 }
0x11de   : > { %v2238_v22 = vadd.f32 %v2492_v19, %v2230_v20  ;;  %v2223_v23 = vmul.f32 %v2833_v21, %v2207_v2 }
0x11e0   : > { %v2506_v24 = vpack.c.bf16 %v2238_v22, %v2238_v22  ;;  %v2231_v49 = vmul.f32 %v2491_v17, %v2223_v23 }
0x11e2   : > { %2249 = vst.msk [vmem:[%s3380_s14] sm:$0xf] %vm2248_vm8, %v2506_v24  ;;  %v2239_v5 = vadd.f32 %v2492_v19, %v2231_v49 }
0x11e4   : > { %v2507_v25 = vpack.c.bf16 %v2239_v5, %v2239_v5 }
0x11e6   : > { %2250 = vst.msk [vmem:[%s3380_s14 + $0x4] sm:$0xf] %vm2248_vm8, %v2507_v25 }
0x11e7 PF: > { %s3400_s30 = sld [smem:[#allocation4_spill]] }
0x11e8   : > { %s3401_s29 = sld [smem:[#allocation3_spill]] }
0x11ed   : > { %s24_s15 = sadd.s32 1, %s3400_s30   ;;  %s3402_s30 = sld [smem:[#allocation5_spill]] }
0x11ee   : > { %p21_p8 = scmp.ge.s32.totalorder %s24_s15, 4  }
0x11f0   :  { %23 = sbr.rel (!%p21_p8) target bundleno = 6 (0x6), region = 151 }

</bundles_post_ra>
